<compile_context>
chip_gen: v7x
topology: tpu7x:2x2x1
jax: 0.10.0
libtpu: 0.0.40
codegen_flags: <defaults>
</compile_context>

<pallas_src>
from functools import partial

import jax
import jax.numpy as jnp
from jax.experimental import pallas as pl
from jax.experimental.pallas import tpu as pltpu


def fused_attn_kernel(x_ref, wqkv_ref, bqkv_ref, wp_ref, bp_ref, o_ref, *,
                      B, N, D, scale):
    x = x_ref[...]                                                       # (B*N, D)

    # Fused qkv projection: single MXU matmul + single bias add.
    qkv = jnp.dot(x, wqkv_ref[...], preferred_element_type=jnp.float32) + bqkv_ref[...]

    # torch.chunk(..., 3, dim=-1): static lane-aligned slices of the VMEM value.
    q = qkv[:, :D].reshape(B, N, D)
    k = qkv[:, D:2 * D].reshape(B, N, D)
    v = qkv[:, 2 * D:].reshape(B, N, D)

    # Scores: batched contraction over D (no transposed copy of k materialized).
    s = jnp.einsum('bqd,bkd->bqk', q, k, preferred_element_type=jnp.float32) * scale

    # Numerically-stable softmax; divide replaced by EUP approximate reciprocal.
    s = s - jnp.max(s, axis=-1, keepdims=True)
    p = jnp.exp(s)
    p = p * pl.reciprocal(jnp.sum(p, axis=-1, keepdims=True), approx=True)

    # attn @ v   (attn_drop is eval-mode identity)
    y = jnp.einsum('bqk,bkd->bqd', p, v, preferred_element_type=jnp.float32)   # (B,N,D)

    # torch: (attn @ v).transpose(1, 2).reshape(qkv.shape) — in-VMEM XLU transpose.
    z = jnp.transpose(y, (0, 2, 1)).reshape(B * N, D)

    # Output projection (proj_drop is eval-mode identity), lane-dense store.
    o_ref[...] = jnp.dot(z, wp_ref[...], preferred_element_type=jnp.float32) + bp_ref[...]


def attention_forward(x, params, *, scale):
    B, N, D = x.shape
    wqkv, bqkv, wp, bp = params
    x2d = x.reshape(B * N, D)                 # free metadata reshape in XLA

    vmem = pl.BlockSpec(memory_space=pltpu.MemorySpace.VMEM)
    out2d = pl.pallas_call(
        partial(fused_attn_kernel, B=B, N=N, D=D, scale=scale),
        out_shape=jax.ShapeDtypeStruct((B * N, D), jnp.float32),
        in_specs=[vmem] * 5,
        out_specs=vmem,
    )(x2d, wqkv, bqkv, wp, bp)
    return out2d.reshape(B, N, D)             # free metadata reshape in XLA


if __name__ == "__main__":
    # Small shapes consistent with the module's (batch, seq, embed) convention,
    # chosen lane-aligned (D multiple of 128) so stores are unmasked.
    B, N, D = 2, 128, 128
    key = jax.random.PRNGKey(0)
    k1, k2, k3, k4, k5 = jax.random.split(key, 5)

    x = jax.random.normal(k1, (B, N, D), jnp.float32)

    # Parameter init (shapes follow nn.Linear(D, 3D) / nn.Linear(D, D), torch (out, in)).
    w_qkv = jax.random.normal(k2, (3 * D, D), jnp.float32) / jnp.sqrt(D)
    b_qkv = jax.random.normal(k3, (3 * D,), jnp.float32) * 0.1
    w_proj = jax.random.normal(k4, (D, D), jnp.float32) / jnp.sqrt(D)
    b_proj = jax.random.normal(k5, (D,), jnp.float32) * 0.1

    # Pack for the kernel: input-major fused qkv weight (D, 3D); column order
    # matches torch.chunk(Linear(x), 3, dim=-1).
    wqkv = w_qkv.T                       # (D, 3D)
    bqkv = b_qkv.reshape(1, 3 * D)
    wp = w_proj.T                        # (D, D)
    bp = b_proj.reshape(1, D)

    scale = 1.0  # qk_scale=1 is truthy in the reference script -> self.scale == 1

    out = attention_forward(x, (wqkv, bqkv, wp, bp), scale=scale)
    out = jax.block_until_ready(out)

    # Pure-JAX reference mirroring the PyTorch forward.
    qkv_full = x @ w_qkv.T + b_qkv
    q_r, k_r, v_r = jnp.split(qkv_full, 3, axis=-1)
    attn = jax.nn.softmax((q_r @ jnp.swapaxes(k_r, -2, -1)) * scale, axis=-1)
    ref = jnp.transpose(attn @ v_r, (0, 2, 1)).reshape(B, N, D) @ w_proj.T + b_proj

    assert out.shape == (B, N, D) and out.dtype == jnp.float32
    # Tolerance relaxed slightly vs exact-divide version because of the EUP
    # approximate reciprocal in the softmax denominator.
    assert jnp.allclose(out, ref, atol=2e-3, rtol=2e-3)

    print("KERNEL_OK")
</pallas_src>

<mosaic_0001>
module attributes {stable_mosaic.version = 11 : i64} {
  func.func @fused_attn_kernel(%arg0: memref<256x128xf32, #tpu.memory_space<vmem>>, %arg1: memref<128x384xf32, #tpu.memory_space<vmem>>, %arg2: memref<1x384xf32, #tpu.memory_space<vmem>>, %arg3: memref<128x128xf32, #tpu.memory_space<vmem>>, %arg4: memref<1x128xf32, #tpu.memory_space<vmem>>, %arg5: memref<256x128xf32, #tpu.memory_space<vmem>>) attributes {dimension_semantics = [], scalar_prefetch = 0 : i64, scratch_operands = 0 : i64, tpu.core_type = #tpu.core_type<tc>} {
    %c0 = arith.constant 0 : index
    %c0_0 = arith.constant 0 : index
    %0 = vector.load %arg0[%c0, %c0_0] : memref<256x128xf32, #tpu.memory_space<vmem>>, vector<256x128xf32>
    %c0_1 = arith.constant 0 : index
    %c0_2 = arith.constant 0 : index
    %1 = vector.load %arg1[%c0_1, %c0_2] : memref<128x384xf32, #tpu.memory_space<vmem>>, vector<128x384xf32>
    %cst = arith.constant dense<0.000000e+00> : vector<256x384xf32>
    %2 = tpu.matmul %0, %1, %cst {dimension_numbers = #tpu.dot_dimension_numbers<[1], [0], [0], [1], [0, 0, 1, 1], [], []>} : vector<256x128xf32>, vector<128x384xf32>, vector<256x384xf32> -> vector<256x384xf32>
    %c0_3 = arith.constant 0 : index
    %c0_4 = arith.constant 0 : index
    %3 = vector.load %arg2[%c0_3, %c0_4] : memref<1x384xf32, #tpu.memory_space<vmem>>, vector<1x384xf32>
    %4 = vector.broadcast %3 : vector<1x384xf32> to vector<256x384xf32>
    %5 = arith.addf %2, %4 : vector<256x384xf32>
    %6 = vector.extract_strided_slice %5 {offsets = [0, 0], sizes = [256, 128], strides = [1, 1]} : vector<256x384xf32> to vector<256x128xf32>
    %7 = vector.shape_cast %6 : vector<256x128xf32> to vector<2x128x128xf32>
    %8 = vector.extract_strided_slice %5 {offsets = [0, 128], sizes = [256, 128], strides = [1, 1]} : vector<256x384xf32> to vector<256x128xf32>
    %9 = vector.shape_cast %8 : vector<256x128xf32> to vector<2x128x128xf32>
    %10 = vector.extract_strided_slice %5 {offsets = [0, 256], sizes = [256, 128], strides = [1, 1]} : vector<256x384xf32> to vector<256x128xf32>
    %11 = vector.shape_cast %10 : vector<256x128xf32> to vector<2x128x128xf32>
    "tpu.trace_start"() <{level = 10 : i32, message = "bqd,bkd->bqk"}> : () -> ()
    %cst_5 = arith.constant dense<0.000000e+00> : vector<2x128x128xf32>
    %12 = tpu.matmul %7, %9, %cst_5 {dimension_numbers = #tpu.dot_dimension_numbers<[2], [2], [1], [1], [0, 0, 0, 1, 1, 1], [0], [0]>} : vector<2x128x128xf32>, vector<2x128x128xf32>, vector<2x128x128xf32> -> vector<2x128x128xf32>
    "tpu.trace_stop"() : () -> ()
    %cst_6 = arith.constant 1.000000e+00 : f32
    %13 = vector.broadcast %cst_6 : f32 to vector<2x128x128xf32>
    %14 = arith.mulf %12, %13 : vector<2x128x128xf32>
    %cst_7 = arith.constant dense<0xFF800000> : vector<2x128xf32>
    %15 = vector.multi_reduction <maximumf>, %14, %cst_7 [2] : vector<2x128x128xf32> to vector<2x128xf32>
    %16 = vector.shape_cast %15 : vector<2x128xf32> to vector<2x128x1xf32>
    %17 = vector.broadcast %16 : vector<2x128x1xf32> to vector<2x128x128xf32>
    %18 = arith.subf %14, %17 : vector<2x128x128xf32>
    %19 = math.exp %18 : vector<2x128x128xf32>
    %cst_8 = arith.constant dense<0.000000e+00> : vector<2x128xf32>
    %20 = vector.multi_reduction <add>, %19, %cst_8 [2] : vector<2x128x128xf32> to vector<2x128xf32>
    %21 = vector.shape_cast %20 : vector<2x128xf32> to vector<2x128x1xf32>
    %22 = tpu.reciprocal %21 {approx = true} : vector<2x128x1xf32> -> vector<2x128x1xf32>
    %23 = vector.broadcast %22 : vector<2x128x1xf32> to vector<2x128x128xf32>
    %24 = arith.mulf %19, %23 : vector<2x128x128xf32>
    "tpu.trace_start"() <{level = 10 : i32, message = "bqk,bkd->bqd"}> : () -> ()
    %cst_9 = arith.constant dense<0.000000e+00> : vector<2x128x128xf32>
    %25 = tpu.matmul %24, %11, %cst_9 {dimension_numbers = #tpu.dot_dimension_numbers<[2], [1], [1], [2], [0, 0, 0, 1, 1, 2], [0], [0]>} : vector<2x128x128xf32>, vector<2x128x128xf32>, vector<2x128x128xf32> -> vector<2x128x128xf32>
    "tpu.trace_stop"() : () -> ()
    %26 = tpu.transpose %25, [0, 2, 1] : vector<2x128x128xf32> -> vector<2x128x128xf32>
    %27 = vector.shape_cast %26 : vector<2x128x128xf32> to vector<256x128xf32>
    %c0_10 = arith.constant 0 : index
    %c0_11 = arith.constant 0 : index
    %28 = vector.load %arg3[%c0_10, %c0_11] : memref<128x128xf32, #tpu.memory_space<vmem>>, vector<128x128xf32>
    %cst_12 = arith.constant dense<0.000000e+00> : vector<256x128xf32>
    %29 = tpu.matmul %27, %28, %cst_12 {dimension_numbers = #tpu.dot_dimension_numbers<[1], [0], [0], [1], [0, 0, 1, 1], [], []>} : vector<256x128xf32>, vector<128x128xf32>, vector<256x128xf32> -> vector<256x128xf32>
    %c0_13 = arith.constant 0 : index
    %c0_14 = arith.constant 0 : index
    %30 = vector.load %arg4[%c0_13, %c0_14] : memref<1x128xf32, #tpu.memory_space<vmem>>, vector<1x128xf32>
    %31 = vector.broadcast %30 : vector<1x128xf32> to vector<256x128xf32>
    %32 = arith.addf %29, %31 : vector<256x128xf32>
    %c0_15 = arith.constant 0 : index
    %c0_16 = arith.constant 0 : index
    %33 = vector.load %arg5[%c0_15, %c0_16] : memref<256x128xf32, #tpu.memory_space<vmem>>, vector<256x128xf32>
    tpu.vector_store %arg5[%c0_15, %c0_16], %32 {strides = array<i32>} : memref<256x128xf32, #tpu.memory_space<vmem>>, vector<256x128xf32>,
    return
  }
}

</mosaic_0001>

<bundles_post_ra>
// kernel: tpu_custom_call.1
= control target key start
LH: loop header
LB: loop body
LE: loop exit
PB: predicated region body
PF: predicated region fallthrough
CT: control target
= control target key end

     0   :  { %10 = vsyncpa [#allocation3], 0  ;;  %s3695_s0 = inlined_call_operand.hbm [shape: f32[256,128], index: 0, kind: input, shape index: {}]   ;;  %s3696_s1 = inlined_call_operand.hbm [shape: f32[128,384], index: 1, kind: input, shape index: {}]   ;;  %s3697_s2 = inlined_call_operand.vmem [shape: f32[1,384], index: 2, kind: input, shape index: {}]   ;;  %s3698_s3 = inlined_call_operand.hbm [shape: f32[128,128], index: 3, kind: input, shape index: {}]   ;;  %s3699_s4 = inlined_call_operand.vmem [shape: f32[1,128], index: 4, kind: input, shape index: {}]   ;;  %s3700_s5 = inlined_call_operand.hbm [shape: f32[256,128], index: 5, kind: output, shape index: {}]  }
   0x1   :  { %11 = vsyncpa [#allocation6], 0 }
   0x2   :  { %12 = vsyncpa [#allocation4], 0  ;;  %s2951_s18 = smov [#allocation5]   ;;  %s2857_s22 = scalar_lea.hbm %s3696_s1, 6144 }
   0x3   :  { %s30_s19 = sshll.u32 %s2951_s18, 4  ;;  %p2858_p0 = scmp.ne.s32.totalorder %s3696_s1, %s2857_s22  ;;  %s31_s19 = int_to_ptr.vmem [resolvable:$true] %s30_s19 }
   0x4   :  { %p2861_p1 = scmp.lt.u32.totalorder %s2857_s22, %s3696_s1 }
   0x6   :  { %p2863_p2 = pnand %p2861_p1, %p2858_p0 }
   0x8   :  { %2866 = shalt.err (!%p2863_p2)
}
   0x9   :  { %s2867_s27 = scalar_lea.vmem %s31_s19, 6144  ;;  %p2872_p4 = scmp.lt.s32.totalorder %s31_s19, %s31_s19 }
   0xa   :  { %p2868_p3 = scmp.ne.s32.totalorder %s31_s19, %s2867_s27  ;;  %p2873_p5 = scmp.lt.s32.totalorder %s2867_s27, %s2867_s27 }
   0xc   :  { %p2874_p6 = por %p2873_p5, %p2872_p4 }
   0xe   :  { %p2875_p7 = pnand %p2874_p6, %p2868_p3 }
  0x10   :  { %2878 = shalt.err (!%p2875_p7)
}
  0x11   :  { %s2952_s28 = smov 384   ;;  %s2953_s29 = smov 24  }
  0x12   :  { %36 = dma.hbm_to_vmem [thread:$0]  %s3696_s1, 6144, %s31_s19, [#allocation6], %s2952_s28, %s2952_s28, %s2953_s29  }
  0x13   :  { %s2954_s7 = smov [#allocation2]   ;;  %s2879_s11 = scalar_lea.hbm %s3695_s0, 4096 }
  0x14   :  { %s18_s8 = sshll.u32 %s2954_s7, 4  ;;  %p2880_p8 = scmp.ne.s32.totalorder %s3695_s0, %s2879_s11  ;;  %s19_s8 = int_to_ptr.vmem [resolvable:$true] %s18_s8 }
  0x15   :  { %p2883_p9 = scmp.lt.u32.totalorder %s2879_s11, %s3695_s0 }
  0x17   :  { %p2885_p10 = pnand %p2883_p9, %p2880_p8 }
  0x19   :  { %2888 = shalt.err (!%p2885_p10)
}
  0x1a   :  { %s2889_s16 = scalar_lea.vmem %s19_s8, 4096  ;;  %p2894_p12 = scmp.lt.s32.totalorder %s19_s8, %s19_s8 }
  0x1b   :  { %p2890_p11 = scmp.ne.s32.totalorder %s19_s8, %s2889_s16  ;;  %p2895_p13 = scmp.lt.s32.totalorder %s2889_s16, %s2889_s16 }
  0x1d   :  { %p2896_p0 = por %p2895_p13, %p2894_p12 }
  0x1f   :  { %p2897_p1 = pnand %p2896_p0, %p2890_p11 }
  0x21   :  { %2900 = shalt.err (!%p2897_p1)
}
  0x22   :  { %s2955_s1 = smov 128   ;;  %s2956_s17 = smov 8  }
  0x23   :  { %24 = dma.hbm_to_vmem [thread:$0]  %s3695_s0, 4096, %s19_s8, [#allocation3], %s2955_s1, %s2955_s1, %s2956_s17  }
  0x24   :  { %s2957_s20 = smov [#allocation7]   ;;  %s2901_s24 = scalar_lea.hbm %s3698_s3, 2048 }
  0x25   :  { %s44_s21 = sshll.u32 %s2957_s20, 4  ;;  %p2902_p2 = scmp.ne.s32.totalorder %s3698_s3, %s2901_s24  ;;  %s45_s21 = int_to_ptr.vmem [resolvable:$true] %s44_s21 }
  0x26   :  { %p2905_p3 = scmp.lt.u32.totalorder %s2901_s24, %s3698_s3 }
  0x28   :  { %p2907_p4 = pnand %p2905_p3, %p2902_p2 }
  0x2a   :  { %2910 = shalt.err (!%p2907_p4)
}
  0x2b   :  { %s2911_s29 = scalar_lea.vmem %s45_s21, 2048  ;;  %p2916_p6 = scmp.lt.s32.totalorder %s45_s21, %s45_s21 }
  0x2c   :  { %p2912_p5 = scmp.ne.s32.totalorder %s45_s21, %s2911_s29  ;;  %p2917_p7 = scmp.lt.s32.totalorder %s2911_s29, %s2911_s29 }
  0x2e   :  { %p2918_p8 = por %p2917_p7, %p2916_p6 }
  0x30   :  { %p2919_p9 = pnand %p2918_p8, %p2912_p5 }
  0x32   :  { %2922 = shalt.err (!%p2919_p9)
}
  0x33   :  { %50 = dma.hbm_to_vmem [thread:$0]  %s3698_s3, 2048, %s45_s21, [#allocation6], %s2955_s1, %s2955_s1, %s2956_s17  }
  0x34   :  { %2945 = dma.done.wait [#allocation3], 4096  }
  0x35   :  { %2946 = vsyncadd [#allocation3], 4294963200 }
  0x36   :  { %2947 = dma.done.wait [#allocation6], 8192  }
  0x37   :  { %2948 = vsyncadd [#allocation6], 4294959104  ;;  %v2958_v0 = vmov 0.0   ;;  %v95_v1 = vld [vmem:[#allocation5 + $0x8] sm:$0xff]  ;;  %v98_v2 = vld [vmem:[#allocation5 + $0x20] sm:$0xff] }
  0x38   :  { %223 = vmatprep.mubr.f32.mxu0 %v2958_v0  ;;  %367 = vmatprep.mubr.f32.mxu1 %v2958_v0  ;;  %v94_v3 = vld [vmem:[#allocation5] sm:$0xff]  ;;  %v2480_v4 = vpack.c.bf16 %v98_v2, %v95_v1  ;;  %v97_v5 = vld [vmem:[#allocation5 + $0x18] sm:$0xff]  ;;  %v104_v7 = vld [vmem:[#allocation5 + $0x50] sm:$0xff] }
  0x39   :  { %v101_v6 = vld [vmem:[#allocation5 + $0x38] sm:$0xff]  ;;  %v2482_v8 = vpack.c.bf16 %v97_v5, %v94_v3  ;;  %v100_v10 = vld [vmem:[#allocation5 + $0x30] sm:$0xff]  ;;  %v103_v11 = vld [vmem:[#allocation5 + $0x48] sm:$0xff] }
  0x3a   :  { %v2484_v9 = vpack.c.bf16 %v104_v7, %v101_v6  ;;  %v107_v12 = vld [vmem:[#allocation5 + $0x68] sm:$0xff]  ;;  %2481 = vmatprep.subr.bf16.mxu0 %v2480_v4  ;;  %v110_v13 = vld [vmem:[#allocation5 + $0x80] sm:$0xff]  ;;  %2704 = vmatprep.subr.bf16.mxu1 %v2480_v4  ;;  %v2486_v14 = vpack.c.bf16 %v103_v11, %v100_v10  ;;  %v109_v17 = vld [vmem:[#allocation5 + $0x78] sm:$0xff] }
  0x3b   :  { %2483 = vmatpush1.bf16.msra.mxu0 %v2482_v8  ;;  %2712 = vmatpush1.bf16.msra.mxu1 %v2482_v8  ;;  %v2488_v15 = vpack.c.bf16 %v110_v13, %v107_v12  ;;  %v106_v16 = vld [vmem:[#allocation5 + $0x60] sm:$0xff]  ;;  %v113_v18 = vld [vmem:[#allocation5 + $0x98] sm:$0xff]  ;;  %v116_v19 = vld [vmem:[#allocation5 + $0xb0] sm:$0xff] }
  0x3c   :  { %2485 = vmatprep.subr.bf16.mxu0 %v2484_v9  ;;  %2705 = vmatprep.subr.bf16.mxu1 %v2484_v9  ;;  %v2490_v20 = vpack.c.bf16 %v109_v17, %v106_v16  ;;  %v2492_v21 = vpack.c.bf16 %v116_v19, %v113_v18  ;;  %v112_v22 = vld [vmem:[#allocation5 + $0x90] sm:$0xff]  ;;  %v115_v23 = vld [vmem:[#allocation5 + $0xa8] sm:$0xff]  ;;  %v122_v25 = vld [vmem:[#allocation5 + $0xe0] sm:$0xff] }
  0x3d   :  { %v119_v24 = vld [vmem:[#allocation5 + $0xc8] sm:$0xff]  ;;  %v2494_v26 = vpack.c.bf16 %v115_v23, %v112_v22  ;;  %v118_v28 = vld [vmem:[#allocation5 + $0xc0] sm:$0xff]  ;;  %v121_v29 = vld [vmem:[#allocation5 + $0xd8] sm:$0xff] }
  0x3e   :  { %v2496_v27 = vpack.c.bf16 %v122_v25, %v119_v24  ;;  %v125_v30 = vld [vmem:[#allocation5 + $0xf8] sm:$0xff]  ;;  %v128_v31 = vld [vmem:[#allocation5 + $0x110] sm:$0xff]  ;;  %v2498_v32 = vpack.c.bf16 %v121_v29, %v118_v28  ;;  %v127_v35 = vld [vmem:[#allocation5 + $0x108] sm:$0xff] }
  0x3f   :  { %2487 = vmatpush1.bf16.msra.mxu0 %v2486_v14  ;;  %2713 = vmatpush1.bf16.msra.mxu1 %v2486_v14  ;;  %v2500_v33 = vpack.c.bf16 %v128_v31, %v125_v30  ;;  %v124_v34 = vld [vmem:[#allocation5 + $0xf0] sm:$0xff]  ;;  %v131_v36 = vld [vmem:[#allocation5 + $0x128] sm:$0xff]  ;;  %v134_v37 = vld [vmem:[#allocation5 + $0x140] sm:$0xff] }
  0x40   :  { %2489 = vmatprep.subr.bf16.mxu0 %v2488_v15  ;;  %2706 = vmatprep.subr.bf16.mxu1 %v2488_v15  ;;  %v2502_v38 = vpack.c.bf16 %v127_v35, %v124_v34  ;;  %v2504_v39 = vpack.c.bf16 %v134_v37, %v131_v36  ;;  %v130_v40 = vld [vmem:[#allocation5 + $0x120] sm:$0xff]  ;;  %v133_v41 = vld [vmem:[#allocation5 + $0x138] sm:$0xff]  ;;  %v140_v43 = vld [vmem:[#allocation5 + $0x170] sm:$0xff] }
  0x41   :  { %v137_v42 = vld [vmem:[#allocation5 + $0x158] sm:$0xff]  ;;  %v2506_v44 = vpack.c.bf16 %v133_v41, %v130_v40  ;;  %v136_v46 = vld [vmem:[#allocation5 + $0x150] sm:$0xff]  ;;  %v139_v47 = vld [vmem:[#allocation5 + $0x168] sm:$0xff] }
  0x42   :  { %v2508_v45 = vpack.c.bf16 %v140_v43, %v137_v42  ;;  %v96_v48 = vld [vmem:[#allocation5 + $0x10] sm:$0xff]  ;;  %v99_v49 = vld [vmem:[#allocation5 + $0x28] sm:$0xff]  ;;  %v2510_v50 = vpack.c.bf16 %v139_v47, %v136_v46  ;;  %v102_v52 = vld [vmem:[#allocation5 + $0x40] sm:$0xff]  ;;  %v144_v42 = vlaneseq }
  0x43   :  { %2491 = vmatpush1.bf16.msra.mxu0 %v2490_v20  ;;  %2714 = vmatpush1.bf16.msra.mxu1 %v2490_v20  ;;  %v2512_v51 = vpack.c.bf16 %v99_v49, %v96_v48  ;;  %v105_v53 = vld [vmem:[#allocation5 + $0x58] sm:$0xff]  ;;  %v3034_v54 = vld [vmem:[#allocation2] sm:$0xff]  ;;  %v108_v57 = vld [vmem:[#allocation5 + $0x70] sm:$0xff] }
  0x44   :  { %2493 = vmatprep.subr.bf16.mxu0 %v2492_v21  ;;  %2707 = vmatprep.subr.bf16.mxu1 %v2492_v21  ;;  %v3036_v55 = vld [vmem:[#allocation2 + $0xc0] sm:$0xff]  ;;  %v2516_v56 = vpack.c.bf16 %v105_v53, %v102_v52  ;;  %v111_v58 = vld [vmem:[#allocation5 + $0x88] sm:$0xff]  ;;  %v117_v63 = vld [vmem:[#allocation5 + $0xb8] sm:$0xff]  ;;  %v3108_v43 = vshrl.u32 %v144_v42, 7 }
  0x45   :  { %v3041_v59 = vld [vmem:[#allocation2 + $0x8] sm:$0xff]  ;;  %v2520_v61 = vpack.c.bf16 %v111_v58, %v108_v57  ;;  %v114_v62 = vld [vmem:[#allocation5 + $0xa0] sm:$0xff]  ;;  %v3049_v1 = vld [vmem:[#allocation2 + $0x10] sm:$0xff] }
  0x46   :  { %v3044_v60 = vld [vmem:[#allocation2 + $0xc8] sm:$0xff]  ;;  %v3052_v2 = vld [vmem:[#allocation2 + $0xd0] sm:$0xff]  ;;  %v2524_v3 = vpack.c.bf16 %v117_v63, %v114_v62  ;;  %v65_v6 = vld [vmem:[#allocation2 + $0x18] sm:$0xff] }
  0x47   :  { %2495 = vmatpush1.bf16.msra.mxu0 %v2494_v26  ;;  %2715 = vmatpush1.bf16.msra.mxu1 %v2494_v26  ;;  %v120_v4 = vld [vmem:[#allocation5 + $0xd0] sm:$0xff]  ;;  %v123_v5 = vld [vmem:[#allocation5 + $0xe8] sm:$0xff]  ;;  %v3058_v7 = vld [vmem:[#allocation2 + $0xd8] sm:$0xff] }
  0x48   :  { %2497 = vmatprep.subr.bf16.mxu0 %v2496_v27  ;;  %2708 = vmatprep.subr.bf16.mxu1 %v2496_v27  ;;  %v2528_v8 = vpack.c.bf16 %v123_v5, %v120_v4  ;;  %v126_v9 = vld [vmem:[#allocation5 + $0x100] sm:$0xff]  ;;  %v129_v10 = vld [vmem:[#allocation5 + $0x118] sm:$0xff]  ;;  %v132_v14 = vld [vmem:[#allocation5 + $0x130] sm:$0xff] }
  0x49   :  { %v66_v11 = vld [vmem:[#allocation2 + $0x20] sm:$0xff]  ;;  %v2532_v13 = vpack.c.bf16 %v129_v10, %v126_v9  ;;  %v135_v15 = vld [vmem:[#allocation5 + $0x148] sm:$0xff]  ;;  %v141_v20 = vld [vmem:[#allocation5 + $0x178] sm:$0xff] }
  0x4a   :  { %v3063_v12 = vld [vmem:[#allocation2 + $0xe0] sm:$0xff]  ;;  %v67_v16 = vld [vmem:[#allocation2 + $0x28] sm:$0xff]  ;;  %v2536_v18 = vpack.c.bf16 %v135_v15, %v132_v14  ;;  %v68_v21 = vld [vmem:[#allocation2 + $0x30] sm:$0xff] }
  0x4b   :  { %2499 = vmatpush1.bf16.msra.mxu0 %v2498_v32  ;;  %2716 = vmatpush1.bf16.msra.mxu1 %v2498_v32  ;;  %v3068_v17 = vld [vmem:[#allocation2 + $0xe8] sm:$0xff]  ;;  %v138_v19 = vld [vmem:[#allocation5 + $0x160] sm:$0xff]  ;;  %v3073_v22 = vld [vmem:[#allocation2 + $0xf0] sm:$0xff] }
  0x4c   :  { %2501 = vmatprep.subr.bf16.mxu0 %v2500_v33  ;;  %2709 = vmatprep.subr.bf16.mxu1 %v2500_v33  ;;  %v2540_v23 = vpack.c.bf16 %v141_v20, %v138_v19  ;;  %v69_v24 = vld [vmem:[#allocation2 + $0x38] sm:$0xff]  ;;  %v70_v26 = vld [vmem:[#allocation2 + $0x40] sm:$0xff]  ;;  %v71_v27 = vld [vmem:[#allocation2 + $0x48] sm:$0xff] }
  0x4d   :  { %v3078_v25 = vld [vmem:[#allocation2 + $0xf8] sm:$0xff]  ;;  %v72_v28 = vld [vmem:[#allocation2 + $0x50] sm:$0xff]  ;;  %v74_v30 = vld [vmem:[#allocation2 + $0x60] sm:$0xff] }
  0x4e   :  { %v73_v29 = vld [vmem:[#allocation2 + $0x58] sm:$0xff]  ;;  %v75_v31 = vld [vmem:[#allocation2 + $0x68] sm:$0xff]  ;;  %v76_v32 = vld [vmem:[#allocation2 + $0x70] sm:$0xff] }
  0x4f   :  { %2503 = vmatpush1.bf16.msra.mxu0 %v2502_v38  ;;  %2717 = vmatpush1.bf16.msra.mxu1 %v2502_v38  ;;  %v77_v33 = vld [vmem:[#allocation2 + $0x78] sm:$0xff]  ;;  %v78_v34 = vld [vmem:[#allocation2 + $0x80] sm:$0xff]  ;;  %v79_v35 = vld [vmem:[#allocation2 + $0x88] sm:$0xff] }
  0x50   :  { %2505 = vmatprep.subr.bf16.mxu0 %v2504_v39  ;;  %2710 = vmatprep.subr.bf16.mxu1 %v2504_v39  ;;  %v80_v36 = vld [vmem:[#allocation2 + $0x90] sm:$0xff]  ;;  %v81_v37 = vld [vmem:[#allocation2 + $0x98] sm:$0xff]  ;;  %v82_v38 = vld [vmem:[#allocation2 + $0xa0] sm:$0xff] }
  0x51   :  { %v83_v39 = vld [vmem:[#allocation2 + $0xa8] sm:$0xff]  ;;  %v84_v40 = vld [vmem:[#allocation2 + $0xb0] sm:$0xff]  ;;  %v85_v41 = vld [vmem:[#allocation2 + $0xb8] sm:$0xff] }
  0x53   :  { %2507 = vmatpush1.bf16.msra.mxu0 %v2506_v44  ;;  %2718 = vmatpush1.bf16.msra.mxu1 %v2506_v44  ;;  %v146_v44 = vsub.s32 0, %v3108_v43 }
  0x54   :  { %2509 = vmatprep.subr.bf16.mxu0 %v2508_v45  ;;  %2711 = vmatprep.subr.bf16.mxu1 %v2508_v45  ;;  %v3114_v45 = vld [vmem:[%s3697_s2] sm:$0x7] }
  0x55   :  { %v3117_v46 = vrot.slane %v3114_v45, %v146_v44 }
  0x57   :  { %2511 = vmatpush1.bf16.msra.mxu0 %v2510_v50  ;;  %2719 = vmatpush1.bf16.msra.mxu1 %v2510_v50 }
  0x58   :  { %2513 = vmatprep.subr.bf16.mxu1 %v2512_v51 }
  0x5a   :  { %224 = vmatmul.mubr.f32.vlgmr.msra.gmra.mrb[0].mxu0 %v3034_v54  ;;  %368 = vmatmul.mubr.f32.vlgmr.msra.gmra.mrb[0].mxu1 %v3036_v55 }
  0x5b   :  { %229 = vmatprep.mubr.f32.mxu0 %v2958_v0  ;;  %373 = vmatprep.mubr.f32.mxu1 %v2958_v0 }
  0x5c   :  { %2515 = vmatpush3.bf16.msra.mxu1 %v2512_v51 }
  0x5d   :  { %2517 = vmatprep.subr.bf16.mxu1 %v2516_v56 }
  0x5e   :  { %230 = vmatmul.mubr.f32.gmra.mrb[2].mxu0 %v3041_v59  ;;  %374 = vmatmul.mubr.f32.gmra.mrb[2].mxu1 %v3044_v60 }
  0x5f   :  { %235 = vmatprep.mubr.f32.mxu0 %v2958_v0  ;;  %379 = vmatprep.mubr.f32.mxu1 %v2958_v0 }
  0x60   :  { %2519 = vmatpush3.bf16.msra.mxu1 %v2516_v56 }
  0x61   :  { %2521 = vmatprep.subr.bf16.mxu1 %v2520_v61 }
  0x62   :  { %236 = vmatmul.mubr.f32.gmra.mrb[4].mxu0 %v3049_v1  ;;  %380 = vmatmul.mubr.f32.gmra.mrb[4].mxu1 %v3052_v2 }
  0x63   :  { %241 = vmatprep.mubr.f32.mxu0 %v2958_v0  ;;  %385 = vmatprep.mubr.f32.mxu1 %v2958_v0 }
  0x64   :  { %2523 = vmatpush3.bf16.msra.mxu1 %v2520_v61 }
  0x65   :  { %2525 = vmatprep.subr.bf16.mxu1 %v2524_v3 }
  0x66   :  { %242 = vmatmul.mubr.f32.gmra.mrb[6].mxu0 %v65_v6  ;;  %386 = vmatmul.mubr.f32.gmra.mrb[6].mxu1 %v3058_v7 }
  0x67   :  { %247 = vmatprep.mubr.f32.mxu0 %v2958_v0  ;;  %391 = vmatprep.mubr.f32.mxu1 %v2958_v0 }
  0x68   :  { %2527 = vmatpush3.bf16.msra.mxu1 %v2524_v3 }
  0x69   :  { %2529 = vmatprep.subr.bf16.mxu1 %v2528_v8 }
  0x6a   :  { %248 = vmatmul.mubr.f32.gmra.mrb[8].mxu0 %v66_v11  ;;  %392 = vmatmul.mubr.f32.gmra.mrb[8].mxu1 %v3063_v12 }
  0x6b   :  { %253 = vmatprep.mubr.f32.mxu0 %v2958_v0  ;;  %397 = vmatprep.mubr.f32.mxu1 %v2958_v0 }
  0x6c   :  { %2531 = vmatpush3.bf16.msra.mxu1 %v2528_v8 }
  0x6d   :  { %2533 = vmatprep.subr.bf16.mxu1 %v2532_v13 }
  0x6e   :  { %254 = vmatmul.mubr.f32.gmra.mrb[10].mxu0 %v67_v16  ;;  %398 = vmatmul.mubr.f32.gmra.mrb[10].mxu1 %v3068_v17 }
  0x6f   :  { %259 = vmatprep.mubr.f32.mxu0 %v2958_v0  ;;  %403 = vmatprep.mubr.f32.mxu1 %v2958_v0 }
  0x70   :  { %2535 = vmatpush3.bf16.msra.mxu1 %v2532_v13 }
  0x71   :  { %2537 = vmatprep.subr.bf16.mxu1 %v2536_v18 }
  0x72   :  { %260 = vmatmul.mubr.f32.gmra.mrb[12].mxu0 %v68_v21  ;;  %404 = vmatmul.mubr.f32.gmra.mrb[12].mxu1 %v3073_v22 }
  0x73   :  { %265 = vmatprep.mubr.f32.mxu0 %v2958_v0  ;;  %409 = vmatprep.mubr.f32.mxu1 %v2958_v0 }
  0x74   :  { %2539 = vmatpush3.bf16.msra.mxu1 %v2536_v18 }
  0x75   :  { %2541 = vmatprep.subr.bf16.mxu1 %v2540_v23 }
  0x76   :  { %266 = vmatmul.mubr.f32.gmra.mrb[14].mxu0 %v69_v24  ;;  %410 = vmatmul.mubr.f32.gmra.mrb[14].mxu1 %v3078_v25 }
  0x77   :  { %271 = vmatprep.mubr.f32.mxu0 %v2958_v0  ;;  %2128 = vmatprep.mubr.f32.mxu1 %v3034_v54 }
  0x78   :  { %2543 = vmatpush3.bf16.msra.mxu1 %v2540_v23 }
  0x7a   :  { %272 = vmatmul.mubr.f32.gmra.mrb[16].mxu0 %v70_v26 }
  0x7b   :  { %277 = vmatprep.mubr.f32.mxu0 %v2958_v0  ;;  %2129 = vmatmul.mubr.f32.vlgmr.msra.gmra.mrb[16].mxu1 %v3041_v59 }
  0x7c   :  { %2131 = vmatprep.mubr.f32.mxu1 %v3049_v1 }
  0x7e   :  { %278 = vmatmul.mubr.f32.gmra.mrb[18].mxu0 %v71_v27 }
  0x7f   :  { %283 = vmatprep.mubr.f32.mxu0 %v2958_v0  ;;  %2132 = vmatmul.mubr.f32.gmra.mrb[18].mxu1 %v65_v6 }
  0x80   :  { %2134 = vmatprep.mubr.f32.mxu1 %v66_v11 }
  0x82   :  { %284 = vmatmul.mubr.f32.gmra.mrb[20].mxu0 %v72_v28 }
  0x83   :  { %289 = vmatprep.mubr.f32.mxu0 %v2958_v0  ;;  %2135 = vmatmul.mubr.f32.gmra.mrb[20].mxu1 %v67_v16 }
  0x84   :  { %2137 = vmatprep.mubr.f32.mxu1 %v68_v21 }
  0x86   :  { %290 = vmatmul.mubr.f32.gmra.mrb[22].mxu0 %v73_v29 }
  0x87   :  { %295 = vmatprep.mubr.f32.mxu0 %v2958_v0  ;;  %2138 = vmatmul.mubr.f32.gmra.mrb[22].mxu1 %v69_v24 }
  0x88   :  { %2140 = vmatprep.mubr.f32.mxu1 %v70_v26 }
  0x8a   :  { %296 = vmatmul.mubr.f32.gmra.mrb[24].mxu0 %v74_v30 }
  0x8b   :  { %301 = vmatprep.mubr.f32.mxu0 %v2958_v0  ;;  %2141 = vmatmul.mubr.f32.gmra.mrb[24].mxu1 %v71_v27 }
  0x8c   :  { %2143 = vmatprep.mubr.f32.mxu1 %v72_v28 }
  0x8e   :  { %302 = vmatmul.mubr.f32.gmra.mrb[26].mxu0 %v75_v31 }
  0x8f   :  { %307 = vmatprep.mubr.f32.mxu0 %v2958_v0  ;;  %2144 = vmatmul.mubr.f32.gmra.mrb[26].mxu1 %v73_v29 }
  0x90   :  { %2146 = vmatprep.mubr.f32.mxu1 %v74_v30 }
  0x92   :  { %308 = vmatmul.mubr.f32.gmra.mrb[28].mxu0 %v76_v32 }
  0x93   :  { %313 = vmatprep.mubr.f32.mxu0 %v2958_v0  ;;  %2147 = vmatmul.mubr.f32.gmra.mrb[28].mxu1 %v75_v31 }
  0x94   :  { %2149 = vmatprep.mubr.f32.mxu1 %v76_v32 }
  0x96   :  { %314 = vmatmul.mubr.f32.gmra.mrb[30].mxu0 %v77_v33 }
  0x97   :  { %319 = vmatprep.mubr.f32.mxu0 %v2958_v0  ;;  %2150 = vmatmul.mubr.f32.gmra.mrb[30].mxu1 %v77_v33 }
  0x98   :  { %2152 = vmatprep.mubr.f32.mxu1 %v78_v34 }
  0x9a   :  { %320 = vmatmul.mubr.f32.gmra.mrb[32].mxu0 %v78_v34 }
  0x9b   :  { %325 = vmatprep.mubr.f32.mxu0 %v2958_v0  ;;  %2153 = vmatmul.mubr.f32.gmra.mrb[32].mxu1 %v79_v35 }
  0x9c   :  { %2155 = vmatprep.mubr.f32.mxu1 %v80_v36 }
  0x9e   :  { %326 = vmatmul.mubr.f32.gmra.mrb[34].mxu0 %v79_v35 }
  0x9f   :  { %331 = vmatprep.mubr.f32.mxu0 %v2958_v0  ;;  %2156 = vmatmul.mubr.f32.gmra.mrb[34].mxu1 %v81_v37 }
  0xa0   :  { %2158 = vmatprep.mubr.f32.mxu1 %v82_v38 }
  0xa2   :  { %332 = vmatmul.mubr.f32.gmra.mrb[36].mxu0 %v80_v36 }
  0xa3   :  { %337 = vmatprep.mubr.f32.mxu0 %v2958_v0  ;;  %2159 = vmatmul.mubr.f32.gmra.mrb[36].mxu1 %v83_v39 }
  0xa4   :  { %2161 = vmatprep.mubr.f32.mxu1 %v84_v40 }
  0xa6   :  { %338 = vmatmul.mubr.f32.gmra.mrb[38].mxu0 %v81_v37 }
  0xa7   :  { %343 = vmatprep.mubr.f32.mxu0 %v2958_v0  ;;  %2162 = vmatmul.mubr.f32.gmra.mrb[38].mxu1 %v85_v41 }
  0xa8   :  { %2164 = vmatprep.mubr.f32.mxu1 %v3036_v55 }
  0xaa   :  { %344 = vmatmul.mubr.f32.gmra.mrb[40].mxu0 %v82_v38 }
  0xab   :  { %349 = vmatprep.mubr.f32.mxu0 %v2958_v0  ;;  %2165 = vmatmul.mubr.f32.gmra.mrb[40].mxu1 %v3044_v60 }
  0xac   :  { %2167 = vmatprep.mubr.f32.mxu1 %v3052_v2 }
  0xae   :  { %350 = vmatmul.mubr.f32.gmra.mrb[42].mxu0 %v83_v39 }
  0xaf   :  { %355 = vmatprep.mubr.f32.mxu0 %v2958_v0  ;;  %2168 = vmatmul.mubr.f32.gmra.mrb[42].mxu1 %v3058_v7 }
  0xb0   :  { %2170 = vmatprep.mubr.f32.mxu1 %v3063_v12 }
  0xb2   :  { %356 = vmatmul.mubr.f32.gmra.mrb[44].mxu0 %v84_v40 }
  0xb3   :  { %361 = vmatprep.mubr.f32.mxu0 %v2958_v0  ;;  %2171 = vmatmul.mubr.f32.gmra.mrb[44].mxu1 %v3068_v17  ;;  %v150_v0 = vsub.s32 1, %v3108_v43 }
  0xb4   :  { %2173 = vmatprep.mubr.f32.mxu1 %v3073_v22 }
  0xb5   :  { %v3124_v52 = vrot.slane %v3114_v45, %v150_v0 }
  0xb6   :  { %362 = vmatmul.mubr.f32.gmra.mrb[46].mxu0 %v85_v41 }
  0xb7   :  { %2174 = vmatmul.mubr.f32.gmra.mrb[46].mxu1 %v3078_v25 }
 0x12d   :  { %v225_v47 = vpop.f32.mrb[0].mxu0  ;;  %v3120_v48 = vpop.f32.mrb[0].mxu1 }
 0x12e   :  { %v226_v49 = vadd.f32 %v225_v47, %v3117_v46  ;;  %v227_v50 = vpop.f32.mrb[1].mxu0  ;;  %v371_v51 = vpop.f32.mrb[1].mxu1 }
 0x12f   :  { %v372_v54 = vadd.f32 %v371_v51, %v3124_v52  ;;  %v228_v58 = vadd.f32 %v227_v50, %v3124_v52  ;;  %v154_v51 = vsub.s32 2, %v3108_v43 }
 0x130   :  { %2208 = vmatprep.mubr.f32.mxu1 %v226_v49 }
 0x131   :  { %v3126_v53 = vpop.f32.mrb[2].mxu0  ;;  %v3129_v55 = vpop.f32.mrb[2].mxu1 }
 0x132   :  { %v233_v56 = vpop.f32.mrb[3].mxu0  ;;  %v377_v57 = vpop.f32.mrb[3].mxu1 }
 0x133   :  { %v234_v59 = vadd.f32 %v233_v56, %v3124_v52  ;;  %v378_v60 = vadd.f32 %v377_v57, %v3124_v52 }
 0x135   :  { %v2544_v61 = vpack.c.bf16 %v234_v59, %v228_v58  ;;  %v3134_v62 = vpop.f32.mrb[4].mxu0  ;;  %v3136_v63 = vpack.c.bf16 %v378_v60, %v372_v54  ;;  %v3138_v1 = vpop.f32.mrb[4].mxu1  ;;  %v3188_v59 = vrot.slane %v3114_v45, %v154_v51 }
 0x136   :  { %v239_v2 = vpop.f32.mrb[5].mxu0  ;;  %v383_v3 = vpop.f32.mrb[5].mxu1 }
 0x137   :  { %2545 = vmatprep.subr.bf16.mxu1 %v2544_v61  ;;  %v384_v5 = vadd.f32 %v383_v3, %v3124_v52  ;;  %v240_v9 = vadd.f32 %v239_v2, %v3124_v52 }
 0x138   :  { %2547 = vmatpush3.bf16.xpose.msra.mxu1 %v2544_v61 }
 0x139   :  { %v3140_v4 = vpop.f32.mrb[6].mxu0  ;;  %v3143_v6 = vpop.f32.mrb[6].mxu1 }
 0x13a   :  { %v245_v7 = vpop.f32.mrb[7].mxu0  ;;  %v389_v8 = vpop.f32.mrb[7].mxu1 }
 0x13b   :  { %v246_v10 = vadd.f32 %v245_v7, %v3124_v52  ;;  %v390_v11 = vadd.f32 %v389_v8, %v3124_v52 }
 0x13d   :  { %v2548_v12 = vpack.c.bf16 %v246_v10, %v240_v9  ;;  %v3148_v13 = vpop.f32.mrb[8].mxu0  ;;  %v3150_v14 = vpack.c.bf16 %v390_v11, %v384_v5  ;;  %v3152_v15 = vpop.f32.mrb[8].mxu1 }
 0x13e   :  { %v251_v16 = vpop.f32.mrb[9].mxu0  ;;  %v395_v17 = vpop.f32.mrb[9].mxu1 }
 0x13f   :  { %2549 = vmatprep.subr.bf16.mxu1 %v2548_v12  ;;  %v396_v19 = vadd.f32 %v395_v17, %v3124_v52  ;;  %v252_v23 = vadd.f32 %v251_v16, %v3124_v52 }
 0x140   :  { %2551 = vmatpush3.bf16.xpose.msra.mxu1 %v2548_v12 }
 0x141   :  { %v3154_v18 = vpop.f32.mrb[10].mxu0  ;;  %v3157_v20 = vpop.f32.mrb[10].mxu1 }
 0x142   :  { %v257_v21 = vpop.f32.mrb[11].mxu0  ;;  %v401_v22 = vpop.f32.mrb[11].mxu1 }
 0x143   :  { %v258_v24 = vadd.f32 %v257_v21, %v3124_v52  ;;  %v402_v25 = vadd.f32 %v401_v22, %v3124_v52 }
 0x145   :  { %v2552_v26 = vpack.c.bf16 %v258_v24, %v252_v23  ;;  %v3162_v27 = vpop.f32.mrb[12].mxu0  ;;  %v3164_v28 = vpack.c.bf16 %v402_v25, %v396_v19  ;;  %v3166_v29 = vpop.f32.mrb[12].mxu1 }
 0x146   :  { %v263_v30 = vpop.f32.mrb[13].mxu0  ;;  %v407_v31 = vpop.f32.mrb[13].mxu1 }
 0x147   :  { %2553 = vmatprep.subr.bf16.mxu1 %v2552_v26  ;;  %v408_v33 = vadd.f32 %v407_v31, %v3124_v52  ;;  %v264_v37 = vadd.f32 %v263_v30, %v3124_v52 }
 0x148   :  { %2555 = vmatpush3.bf16.xpose.msra.mxu1 %v2552_v26 }
 0x149   :  { %v3168_v32 = vpop.f32.mrb[14].mxu0  ;;  %v3171_v34 = vpop.f32.mrb[14].mxu1 }
 0x14a   :  { %v269_v35 = vpop.f32.mrb[15].mxu0  ;;  %v413_v36 = vpop.f32.mrb[15].mxu1 }
 0x14b   :  { %v270_v38 = vadd.f32 %v269_v35, %v3124_v52  ;;  %v414_v39 = vadd.f32 %v413_v36, %v3124_v52 }
 0x14d   :  { %v2556_v40 = vpack.c.bf16 %v270_v38, %v264_v37  ;;  %v3176_v41 = vpop.f32.mrb[16].mxu0  ;;  %v3178_v42 = vpack.c.bf16 %v414_v39, %v408_v33 }
 0x14e   :  { %v275_v44 = vpop.f32.mrb[17].mxu0  ;;  %v2130_v54 = vpop.f32.mrb[16].mxu1 }
 0x14f   :  { %2557 = vmatprep.subr.bf16.mxu1 %v2556_v40  ;;  %v276_v49 = vadd.f32 %v275_v44, %v3124_v52  ;;  %v482_v56 = vpop.f32.mrb[17].mxu1  ;;  %v488_v3 = vadd.f32 %v2130_v54, %v3188_v59 }
 0x150   :  { %2559 = vmatpush3.bf16.xpose.msra.mxu1 %v2556_v40  ;;  %v483_v5 = vadd.f32 %v482_v56, %v3188_v59 }
 0x151   :  { %v3180_v0 = vpop.f32.mrb[18].mxu0 }
 0x152   :  { %v281_v47 = vpop.f32.mrb[19].mxu0  ;;  %v2133_v60 = vpop.f32.mrb[18].mxu1  ;;  %v3197_v45 = vpack.c.bf16 %v488_v3, %v483_v5 }
 0x153   :  { %v282_v50 = vadd.f32 %v281_v47, %v3124_v52  ;;  %v492_v2 = vpop.f32.mrb[19].mxu1  ;;  %v498_v7 = vadd.f32 %v2133_v60, %v3188_v59 }
 0x154   :  { %v493_v43 = vadd.f32 %v492_v2, %v3188_v59 }
 0x155   :  { %v2560_v57 = vpack.c.bf16 %v282_v50, %v276_v49  ;;  %v3185_v58 = vpop.f32.mrb[20].mxu0 }
 0x156   :  { %v287_v61 = vpop.f32.mrb[21].mxu0  ;;  %v2136_v8 = vpop.f32.mrb[20].mxu1  ;;  %v3200_v17 = vpack.c.bf16 %v498_v7, %v493_v43 }
 0x157   :  { %2561 = vmatprep.subr.bf16.mxu1 %v2560_v57  ;;  %v508_v9 = vadd.f32 %v2136_v8, %v3188_v59  ;;  %v502_v10 = vpop.f32.mrb[21].mxu1  ;;  %v288_v21 = vadd.f32 %v287_v61, %v3124_v52 }
 0x158   :  { %2563 = vmatpush3.bf16.xpose.msra.mxu1 %v2560_v57  ;;  %v503_v12 = vadd.f32 %v502_v10, %v3188_v59 }
 0x159   :  { %v3195_v11 = vpop.f32.mrb[22].mxu0 }
 0x15a   :  { %v293_v16 = vpop.f32.mrb[23].mxu0  ;;  %v2139_v19 = vpop.f32.mrb[22].mxu1  ;;  %v3204_v23 = vpack.c.bf16 %v508_v9, %v503_v12 }
 0x15b   :  { %v294_v22 = vadd.f32 %v293_v16, %v3124_v52  ;;  %v518_v24 = vadd.f32 %v2139_v19, %v3188_v59  ;;  %v512_v25 = vpop.f32.mrb[23].mxu1 }
 0x15c   :  { %v513_v26 = vadd.f32 %v512_v25, %v3188_v59 }
 0x15d   :  { %v2564_v30 = vpack.c.bf16 %v294_v22, %v288_v21  ;;  %v3208_v31 = vpop.f32.mrb[24].mxu0 }
 0x15e   :  { %v299_v33 = vpop.f32.mrb[25].mxu0  ;;  %v3210_v35 = vpack.c.bf16 %v518_v24, %v513_v26  ;;  %v2142_v36 = vpop.f32.mrb[24].mxu1 }
 0x15f   :  { %2565 = vmatprep.subr.bf16.mxu1 %v2564_v30  ;;  %v528_v37 = vadd.f32 %v2142_v36, %v3188_v59  ;;  %v522_v38 = vpop.f32.mrb[25].mxu1  ;;  %v300_v50 = vadd.f32 %v299_v33, %v3124_v52 }
 0x160   :  { %2567 = vmatpush3.bf16.xpose.msra.mxu1 %v2564_v30  ;;  %v523_v39 = vadd.f32 %v522_v38, %v3188_v59 }
 0x161   :  { %v3214_v40 = vpop.f32.mrb[26].mxu0 }
 0x162   :  { %v305_v44 = vpop.f32.mrb[27].mxu0  ;;  %v3216_v47 = vpack.c.bf16 %v528_v37, %v523_v39  ;;  %v2145_v49 = vpop.f32.mrb[26].mxu1 }
 0x163   :  { %v306_v51 = vadd.f32 %v305_v44, %v3124_v52  ;;  %v538_v54 = vadd.f32 %v2145_v49, %v3188_v59  ;;  %v532_v56 = vpop.f32.mrb[27].mxu1 }
 0x164   :  { %v533_v57 = vadd.f32 %v532_v56, %v3188_v59 }
 0x165   :  { %v2568_v60 = vpack.c.bf16 %v306_v51, %v300_v50  ;;  %v3222_v61 = vpop.f32.mrb[28].mxu0 }
 0x166   :  { %v311_v2 = vpop.f32.mrb[29].mxu0  ;;  %v3224_v3 = vpack.c.bf16 %v538_v54, %v533_v57  ;;  %v2148_v5 = vpop.f32.mrb[28].mxu1 }
 0x167   :  { %2569 = vmatprep.subr.bf16.mxu1 %v2568_v60  ;;  %v548_v7 = vadd.f32 %v2148_v5, %v3188_v59  ;;  %v542_v8 = vpop.f32.mrb[29].mxu1  ;;  %v312_v19 = vadd.f32 %v311_v2, %v3124_v52 }
 0x168   :  { %2571 = vmatpush3.bf16.xpose.msra.mxu1 %v2568_v60  ;;  %v543_v43 = vadd.f32 %v542_v8, %v3188_v59  ;;  %v232_v8 = vadd.f32 %v3126_v53, %v3117_v46  ;;  %v244_v53 = vadd.f32 %v3140_v4, %v3117_v46 }
 0x169   :  { %v3228_v9 = vpop.f32.mrb[30].mxu0 }
 0x16a   :  { %v317_v10 = vpop.f32.mrb[31].mxu0  ;;  %v3230_v12 = vpack.c.bf16 %v548_v7, %v543_v43  ;;  %v2151_v16 = vpop.f32.mrb[30].mxu1 }
 0x16b   :  { %v318_v21 = vadd.f32 %v317_v10, %v3124_v52  ;;  %v558_v22 = vadd.f32 %v2151_v16, %v3188_v59  ;;  %v552_v24 = vpop.f32.mrb[31].mxu1  ;;  %v238_v16 = vadd.f32 %v3134_v62, %v3117_v46  ;;  %v250_v62 = vadd.f32 %v3148_v13, %v3117_v46 }
 0x16c   :  { %v553_v25 = vadd.f32 %v552_v24, %v3188_v59  ;;  %v256_v13 = vadd.f32 %v3154_v18, %v3117_v46 }
 0x16d   :  { %v2572_v26 = vpack.c.bf16 %v318_v21, %v312_v19  ;;  %v321_v30 = vpop.f32.mrb[32].mxu0 }
 0x16e   :  { %v322_v33 = vadd.f32 %v321_v30, %v3117_v46  ;;  %v323_v36 = vpop.f32.mrb[33].mxu0  ;;  %v3237_v37 = vpack.c.bf16 %v558_v22, %v553_v25  ;;  %v2154_v38 = vpop.f32.mrb[32].mxu1 }
 0x16f   :  { %2573 = vmatprep.subr.bf16.mxu1 %v2572_v26  ;;  %v568_v39 = vadd.f32 %v2154_v38, %v3188_v59  ;;  %v562_v44 = vpop.f32.mrb[33].mxu1  ;;  %v324_v57 = vadd.f32 %v323_v36, %v3124_v52 }
 0x170   :  { %2575 = vmatpush3.bf16.xpose.msra.mxu1 %v2572_v26  ;;  %2264 = vmatprep.mubr.f32.mxu0 %v322_v33  ;;  %v563_v49 = vadd.f32 %v562_v44, %v3188_v59 }
 0x171   :  { %v3241_v50 = vpop.f32.mrb[34].mxu0  ;;  %2609 = vmatprep.subr.bf16.mxu1 %v3197_v45 }
 0x172   :  { %v329_v51 = vpop.f32.mrb[35].mxu0  ;;  %v3244_v54 = vpack.c.bf16 %v568_v39, %v563_v49  ;;  %v2157_v56 = vpop.f32.mrb[34].mxu1 }
 0x173   :  { %v330_v60 = vadd.f32 %v329_v51, %v3124_v52  ;;  %v578_v2 = vadd.f32 %v2157_v56, %v3188_v59  ;;  %v572_v5 = vpop.f32.mrb[35].mxu1 }
 0x174   :  { %v573_v7 = vadd.f32 %v572_v5, %v3188_v59 }
 0x175   :  { %v2576_v43 = vpack.c.bf16 %v330_v60, %v324_v57  ;;  %v3252_v10 = vpop.f32.mrb[36].mxu0  ;;  %v262_v57 = vadd.f32 %v3162_v27, %v3117_v46  ;;  %v274_v27 = vadd.f32 %v3176_v41, %v3117_v46  ;;  %v280_v41 = vadd.f32 %v3180_v0, %v3117_v46 }
 0x176   :  { %v335_v19 = vpop.f32.mrb[37].mxu0  ;;  %v3256_v21 = vpack.c.bf16 %v578_v2, %v573_v7  ;;  %v2160_v22 = vpop.f32.mrb[36].mxu1 }
 0x177   :  { %2209 = vmatmul.mubr.f32.vlgmr.msra.gmra.mrb[48].mxu1 %v232_v8  ;;  %2577 = vmatprep.subr.bf16.mxu0 %v2576_v43  ;;  %v588_v24 = vadd.f32 %v2160_v22, %v3188_v59  ;;  %v582_v25 = vpop.f32.mrb[37].mxu1  ;;  %v336_v39 = vadd.f32 %v335_v19, %v3124_v52 }
 0x178   :  { %2211 = vmatprep.mubr.f32.mxu1 %v238_v16  ;;  %2579 = vmatpush3.bf16.xpose.msra.mxu0 %v2576_v43  ;;  %v583_v26 = vadd.f32 %v582_v25, %v3188_v59 }
 0x179   :  { %v3262_v30 = vpop.f32.mrb[38].mxu0  ;;  %2611 = vmatpush3.bf16.msra.mxu1 %v3197_v45 }
 0x17a   :  { %v341_v33 = vpop.f32.mrb[39].mxu0  ;;  %v3267_v36 = vpack.c.bf16 %v588_v24, %v583_v26  ;;  %v2163_v38 = vpop.f32.mrb[38].mxu1  ;;  %2613 = vmatprep.subr.bf16.mxu1 %v3200_v17 }
 0x17b   :  { %v342_v44 = vadd.f32 %v341_v33, %v3124_v52  ;;  %2212 = vmatmul.mubr.f32.gmra.mrb[50].mxu1 %v244_v53  ;;  %v598_v4 = vadd.f32 %v2163_v38, %v3188_v59  ;;  %v592_v49 = vpop.f32.mrb[39].mxu1  ;;  %v286_v33 = vadd.f32 %v3185_v58, %v3117_v46  ;;  %v298_v58 = vadd.f32 %v3208_v31, %v3117_v46 }
 0x17c   :  { %2214 = vmatprep.mubr.f32.mxu1 %v250_v62  ;;  %v593_v45 = vadd.f32 %v592_v49, %v3188_v59  ;;  %v304_v31 = vadd.f32 %v3214_v40, %v3117_v46  ;;  %v334_v40 = vadd.f32 %v3252_v10, %v3117_v46  ;;  %v406_v10 = vadd.f32 %v3166_v29, %v3117_v46 }
 0x17d   :  { %v2580_v51 = vpack.c.bf16 %v342_v44, %v336_v39  ;;  %v3276_v56 = vpop.f32.mrb[40].mxu0  ;;  %2615 = vmatpush3.bf16.msra.mxu1 %v3200_v17  ;;  %v268_v17 = vadd.f32 %v3168_v32, %v3117_v46 }
 0x17e   :  { %v347_v60 = vpop.f32.mrb[41].mxu0  ;;  %v3281_v2 = vpack.c.bf16 %v598_v4, %v593_v45  ;;  %v2166_v5 = vpop.f32.mrb[40].mxu1  ;;  %2617 = vmatprep.subr.bf16.mxu1 %v3204_v23 }
 0x17f   :  { %2215 = vmatmul.mubr.f32.gmra.mrb[52].mxu1 %v256_v13  ;;  %2581 = vmatprep.subr.bf16.mxu0 %v2580_v51  ;;  %v608_v7 = vadd.f32 %v2166_v5, %v3188_v59  ;;  %v602_v8 = vpop.f32.mrb[41].mxu1  ;;  %v348_v24 = vadd.f32 %v347_v60, %v3124_v52 }
 0x180   :  { %2217 = vmatprep.mubr.f32.mxu1 %v262_v57  ;;  %2583 = vmatpush3.bf16.xpose.msra.mxu0 %v2580_v51  ;;  %v603_v18 = vadd.f32 %v602_v8, %v3188_v59 }
 0x181   :  { %v3288_v43 = vpop.f32.mrb[42].mxu0  ;;  %2619 = vmatpush3.bf16.msra.mxu1 %v3204_v23 }
 0x182   :  { %v353_v16 = vpop.f32.mrb[43].mxu0  ;;  %v3293_v19 = vpack.c.bf16 %v608_v7, %v603_v18  ;;  %v2169_v22 = vpop.f32.mrb[42].mxu1  ;;  %2621 = vmatprep.subr.bf16.mxu1 %v3210_v35  ;;  %v310_v18 = vadd.f32 %v3222_v61, %v3117_v46 }
 0x183   :  { %v354_v25 = vadd.f32 %v353_v16, %v3124_v52  ;;  %2218 = vmatmul.mubr.f32.gmra.mrb[54].mxu1 %v268_v17  ;;  %v618_v32 = vadd.f32 %v2169_v22, %v3188_v59  ;;  %v612_v26 = vpop.f32.mrb[43].mxu1 }
 0x184   :  { %2220 = vmatprep.mubr.f32.mxu1 %v274_v27  ;;  %v613_v23 = vadd.f32 %v612_v26, %v3188_v59 }
 0x185   :  { %v2584_v53 = vpack.c.bf16 %v354_v25, %v348_v24  ;;  %v357_v62 = vpop.f32.mrb[44].mxu0  ;;  %2623 = vmatpush3.bf16.msra.mxu1 %v3210_v35  ;;  %v292_v35 = vadd.f32 %v3195_v11, %v3117_v46 }
 0x186   :  { %v359_v38 = vpop.f32.mrb[45].mxu0  ;;  %v3305_v39 = vpack.c.bf16 %v618_v32, %v613_v23  ;;  %v2172_v44 = vpop.f32.mrb[44].mxu1  ;;  %2625 = vmatprep.subr.bf16.mxu1 %v3216_v47 }
 0x187   :  { %2221 = vmatmul.mubr.f32.gmra.mrb[56].mxu1 %v280_v41  ;;  %2585 = vmatprep.subr.bf16.mxu0 %v2584_v53  ;;  %v628_v4 = vadd.f32 %v2172_v44, %v3188_v59  ;;  %v622_v49 = vpop.f32.mrb[45].mxu1  ;;  %v360_v60 = vadd.f32 %v359_v38, %v3124_v52 }
 0x188   :  { %2223 = vmatprep.mubr.f32.mxu1 %v286_v33  ;;  %2587 = vmatpush3.bf16.xpose.msra.mxu0 %v2584_v53  ;;  %v623_v0 = vadd.f32 %v622_v49, %v3188_v59 }
 0x189   :  { %v363_v45 = vpop.f32.mrb[46].mxu0  ;;  %2627 = vmatpush3.bf16.msra.mxu1 %v3216_v47 }
 0x18a   :  { %v365_v13 = vpop.f32.mrb[47].mxu0  ;;  %v3315_v51 = vpack.c.bf16 %v628_v4, %v623_v0  ;;  %v2175_v57 = vpop.f32.mrb[46].mxu1  ;;  %2629 = vmatprep.subr.bf16.mxu1 %v3224_v3  ;;  %v364_v61 = vadd.f32 %v363_v45, %v3117_v46 }
 0x18b   :  { %v366_v5 = vadd.f32 %v365_v13, %v3124_v52  ;;  %2224 = vmatmul.mubr.f32.gmra.mrb[58].mxu1 %v292_v35  ;;  %v638_v7 = vadd.f32 %v2175_v57, %v3188_v59  ;;  %v632_v11 = vpop.f32.mrb[47].mxu1  ;;  %v316_v52 = vadd.f32 %v3228_v9, %v3117_v46  ;;  %v376_v9 = vadd.f32 %v3129_v55, %v3117_v46 }
 0x18c   :  { %2226 = vmatprep.mubr.f32.mxu1 %v298_v58  ;;  %v633_v47 = vadd.f32 %v632_v11, %v3188_v59  ;;  %v328_v59 = vadd.f32 %v3241_v50, %v3117_v46  ;;  %v394_v50 = vadd.f32 %v3152_v15, %v3117_v46  ;;  %v412_v55 = vadd.f32 %v3171_v34, %v3117_v46 }
 0x18d   :  { %v2588_v8 = vpack.c.bf16 %v366_v5, %v360_v60  ;;  %2631 = vmatpush3.bf16.msra.mxu1 %v3224_v3  ;;  %v370_v3 = vadd.f32 %v3120_v48, %v3117_v46  ;;  %v400_v48 = vadd.f32 %v3157_v20, %v3117_v46 }
 0x18e   :  { %v3327_v17 = vpack.c.bf16 %v638_v7, %v633_v47  ;;  %2633 = vmatprep.subr.bf16.mxu1 %v3230_v12 }
 0x18f   :  { %2227 = vmatmul.mubr.f32.gmra.mrb[60].mxu1 %v304_v31  ;;  %2589 = vmatprep.subr.bf16.mxu0 %v2588_v8 }
 0x190   :  { %2229 = vmatprep.mubr.f32.mxu1 %v310_v18  ;;  %2591 = vmatpush3.bf16.xpose.msra.mxu0 %v2588_v8 }
 0x191   :  { %2593 = vmatprep.subr.bf16.mxu0 %v3136_v63  ;;  %2635 = vmatpush3.bf16.msra.mxu1 %v3230_v12  ;;  %v382_v12 = vadd.f32 %v3138_v1, %v3117_v46 }
 0x192   :  { %2637 = vmatprep.subr.bf16.mxu1 %v3237_v37 }
 0x193   :  { %2230 = vmatmul.mubr.f32.gmra.mrb[62].mxu1 %v316_v52 }
 0x195   :  { %2639 = vmatpush3.bf16.msra.mxu1 %v3237_v37  ;;  %v388_v37 = vadd.f32 %v3143_v6, %v3117_v46 }
 0x196   :  { %2641 = vmatprep.subr.bf16.mxu1 %v3244_v54 }
 0x198   :  { %2595 = vmatpush3.bf16.xpose.msra.mxu0 %v3136_v63  ;;  %v340_v63 = vadd.f32 %v3262_v30, %v3117_v46 }
 0x199   :  { %2597 = vmatprep.subr.bf16.mxu0 %v3150_v14 }
 0x1a0   :  { %2599 = vmatpush3.bf16.xpose.msra.mxu0 %v3150_v14  ;;  %v346_v14 = vadd.f32 %v3276_v56, %v3117_v46 }
 0x1a1   :  { %2601 = vmatprep.subr.bf16.mxu0 %v3164_v28 }
 0x1a8   :  { %2603 = vmatpush3.bf16.xpose.msra.mxu0 %v3164_v28  ;;  %v352_v28 = vadd.f32 %v3288_v43, %v3117_v46 }
 0x1a9   :  { %2605 = vmatprep.subr.bf16.mxu0 %v3178_v42 }
 0x1b0   :  { %2607 = vmatpush3.bf16.xpose.msra.mxu0 %v3178_v42  ;;  %v358_v42 = vadd.f32 %v357_v62, %v3117_v46 }
 0x1b7   :  { %2265 = vmatmul.mubr.f32.vlgmr.msra.gmra.mrb[48].mxu0 %v328_v59 }
 0x1b8   :  { %2267 = vmatprep.mubr.f32.mxu0 %v334_v40 }
 0x1bb   :  { %2268 = vmatmul.mubr.f32.gmra.mrb[50].mxu0 %v340_v63 }
 0x1bc   :  { %2270 = vmatprep.mubr.f32.mxu0 %v346_v14 }
 0x1bf   :  { %2271 = vmatmul.mubr.f32.gmra.mrb[52].mxu0 %v352_v28 }
 0x1c0   :  { %2273 = vmatprep.mubr.f32.mxu0 %v358_v42 }
 0x1c3   :  { %2274 = vmatmul.mubr.f32.gmra.mrb[54].mxu0 %v364_v61 }
 0x1c4   :  { %2276 = vmatprep.mubr.f32.mxu0 %v370_v3 }
 0x1c7   :  { %2277 = vmatmul.mubr.f32.gmra.mrb[56].mxu0 %v376_v9 }
 0x1c8   :  { %2279 = vmatprep.mubr.f32.mxu0 %v382_v12 }
 0x1cb   :  { %2280 = vmatmul.mubr.f32.gmra.mrb[58].mxu0 %v388_v37 }
 0x1cc   :  { %2282 = vmatprep.mubr.f32.mxu0 %v394_v50 }
 0x1cf   :  { %2283 = vmatmul.mubr.f32.gmra.mrb[60].mxu0 %v400_v48 }
 0x1d0   :  { %2285 = vmatprep.mubr.f32.mxu0 %v406_v10 }
 0x1d3   :  { %2286 = vmatmul.mubr.f32.gmra.mrb[62].mxu0 %v412_v55 }
 0x24a   :  { %v3372_v1 = vpop.f32.mrb[48].mxu1 }
 0x24b   :  { %v3374_v6 = vpop.f32.mrb[49].mxu1 }
 0x24c   :  { %931 = vmax.xlane.f32.xlu0 %v3374_v6 }
 0x24e   :  { %v3377_v15 = vpop.f32.mrb[50].mxu1 }
 0x24f   :  { %v3379_v30 = vpop.f32.mrb[51].mxu1 }
 0x250   :  { %933 = vmax.xlane.f32.xlu0 %v3372_v1  ;;  %935 = vmax.xlane.f32.xlu1 %v3379_v30 }
 0x252   :  { %v3383_v20 = vpop.f32.mrb[52].mxu1 }
 0x253   :  { %v3385_v29 = vpop.f32.mrb[53].mxu1 }
 0x254   :  { %937 = vmax.xlane.f32.xlu1 %v3377_v15  ;;  %939 = vmax.xlane.f32.xlu0 %v3385_v29 }
 0x256   :  { %v3389_v46 = vpop.f32.mrb[54].mxu1 }
 0x257   :  { %v3391_v34 = vpop.f32.mrb[55].mxu1 }
 0x258   :  { %941 = vmax.xlane.f32.xlu1 %v3383_v20  ;;  %943 = vmax.xlane.f32.xlu0 %v3391_v34 }
 0x25a   :  { %v3395_v56 = vpop.f32.mrb[56].mxu1 }
 0x25b   :  { %v3397_v43 = vpop.f32.mrb[57].mxu1 }
 0x25c   :  { %945 = vmax.xlane.f32.xlu1 %v3389_v46  ;;  %947 = vmax.xlane.f32.xlu0 %v3397_v43 }
 0x25e   :  { %v3401_v27 = vpop.f32.mrb[58].mxu1 }
 0x25f   :  { %v3403_v16 = vpop.f32.mrb[59].mxu1 }
 0x260   :  { %949 = vmax.xlane.f32.xlu1 %v3395_v56  ;;  %951 = vmax.xlane.f32.xlu0 %v3403_v16 }
 0x262   :  { %v3407_v22 = vpop.f32.mrb[60].mxu1 }
 0x263   :  { %v3409_v24 = vpop.f32.mrb[61].mxu1 }
 0x264   :  { %953 = vmax.xlane.f32.xlu1 %v3401_v27  ;;  %955 = vmax.xlane.f32.xlu0 %v3409_v24 }
 0x266   :  { %v3413_v25 = vpop.f32.mrb[62].mxu1 }
 0x267   :  { %v3415_v32 = vpop.f32.mrb[63].mxu1 }
 0x268   :  { %957 = vmax.xlane.f32.xlu1 %v3407_v22  ;;  %959 = vmax.xlane.f32.xlu0 %v3415_v32 }
 0x26c   :  { %961 = vmax.xlane.f32.xlu1 %v3413_v25 }
 0x28a   :  { %v3420_v26 = vpop.f32.mrb[48].mxu0 }
 0x28b   :  { %v3422_v23 = vpop.f32.mrb[49].mxu0  ;;  %965 = vmax.xlane.f32.xlu1 %v3420_v26 }
 0x28c   :  { %963 = vmax.xlane.f32.xlu0 %v3422_v23 }
 0x28e   :  { %v3426_v41 = vpop.f32.mrb[50].mxu0 }
 0x28f   :  { %v3428_v53 = vpop.f32.mrb[51].mxu0  ;;  %969 = vmax.xlane.f32.xlu1 %v3426_v41 }
 0x290   :  { %967 = vmax.xlane.f32.xlu0 %v3428_v53 }
 0x292   :  { %v3432_v62 = vpop.f32.mrb[52].mxu0 }
 0x293   :  { %v3434_v33 = vpop.f32.mrb[53].mxu0  ;;  %973 = vmax.xlane.f32.xlu1 %v3432_v62 }
 0x294   :  { %971 = vmax.xlane.f32.xlu0 %v3434_v33 }
 0x296   :  { %v3438_v38 = vpop.f32.mrb[54].mxu0 }
 0x297   :  { %v3440_v44 = vpop.f32.mrb[55].mxu0  ;;  %977 = vmax.xlane.f32.xlu1 %v3438_v38 }
 0x298   :  { %975 = vmax.xlane.f32.xlu0 %v3440_v44 }
 0x29a   :  { %v3444_v4 = vpop.f32.mrb[56].mxu0 }
 0x29b   :  { %v3446_v49 = vpop.f32.mrb[57].mxu0  ;;  %981 = vmax.xlane.f32.xlu1 %v3444_v4 }
 0x29c   :  { %979 = vmax.xlane.f32.xlu0 %v3446_v49 }
 0x29e   :  { %v3450_v0 = vpop.f32.mrb[58].mxu0 }
 0x29f   :  { %v3452_v35 = vpop.f32.mrb[59].mxu0  ;;  %985 = vmax.xlane.f32.xlu1 %v3450_v0 }
 0x2a0   :  { %983 = vmax.xlane.f32.xlu0 %v3452_v35 }
 0x2a2   :  { %v3456_v45 = vpop.f32.mrb[60].mxu0 }
 0x2a3   :  { %v3458_v58 = vpop.f32.mrb[61].mxu0  ;;  %989 = vmax.xlane.f32.xlu1 %v3456_v45 }
 0x2a4   :  { %987 = vmax.xlane.f32.xlu0 %v3458_v58 }
 0x2a6   :  { %v3462_v13 = vpop.f32.mrb[62].mxu0 }
 0x2a7   :  { %v3464_v57 = vpop.f32.mrb[63].mxu0  ;;  %993 = vmax.xlane.f32.xlu1 %v3462_v13 }
 0x2a8   :  { %991 = vmax.xlane.f32.xlu0 %v3464_v57 }
 0x2d9   :  { %v932_v60 = vpop.xlane.xlu0 %931 }
 0x2da   :  { %v995_v5 = vsub.f32 %v3374_v6, %v932_v60 }
 0x2dc   :  { %v1027_v7 = vmul.f32 1.442695, %v995_v5 }
 0x2dd   :  { %v934_v11 = vpop.xlane.xlu0 %933  ;;  %v936_v47 = vpop.xlane.xlu1 %935 }
 0x2de   :  { %2729 = vpow2.f32 %v1027_v7  ;;  %v996_v31 = vsub.f32 %v3372_v1, %v934_v11  ;;  %v997_v8 = vsub.f32 %v3379_v30, %v936_v47 }
 0x2e0   :  { %v1029_v18 = vmul.f32 1.442695, %v996_v31  ;;  %v1031_v52 = vmul.f32 1.442695, %v997_v8 }
 0x2e1   :  { %v938_v59 = vpop.xlane.xlu1 %937  ;;  %v940_v40 = vpop.xlane.xlu0 %939 }
 0x2e2   :  { %2731 = vpow2.f32 %v1029_v18  ;;  %v998_v63 = vsub.f32 %v3377_v15, %v938_v59  ;;  %v999_v14 = vsub.f32 %v3385_v29, %v940_v40 }
 0x2e3   :  { %2733 = vpow2.f32 %v1031_v52 }
 0x2e4   :  { %v1033_v28 = vmul.f32 1.442695, %v998_v63  ;;  %v1035_v42 = vmul.f32 1.442695, %v999_v14 }
 0x2e5   :  { %v942_v61 = vpop.xlane.xlu1 %941  ;;  %v944_v3 = vpop.xlane.xlu0 %943 }
 0x2e6   :  { %2735 = vpow2.f32 %v1033_v28  ;;  %v1000_v9 = vsub.f32 %v3383_v20, %v942_v61  ;;  %v1001_v12 = vsub.f32 %v3391_v34, %v944_v3 }
 0x2e7   :  { %2737 = vpow2.f32 %v1035_v42 }
 0x2e8   :  { %v3475_v37 = vpop.eup %2729  ;;  %v1037_v50 = vmul.f32 1.442695, %v1000_v9  ;;  %v1039_v48 = vmul.f32 1.442695, %v1001_v12 }
 0x2e9   :  { %v946_v10 = vpop.xlane.xlu1 %945  ;;  %v948_v55 = vpop.xlane.xlu0 %947  ;;  %1091 = vadd.xlane.f32.xlu0 %v3475_v37 }
 0x2ea   :  { %2739 = vpow2.f32 %v1037_v50  ;;  %v1002_v1 = vsub.f32 %v3389_v46, %v946_v10  ;;  %v1003_v6 = vsub.f32 %v3397_v43, %v948_v55 }
 0x2eb   :  { %2741 = vpow2.f32 %v1039_v48 }
 0x2ec   :  { %v3480_v15 = vpop.eup %2731  ;;  %v1041_v30 = vmul.f32 1.442695, %v1002_v1  ;;  %v1043_v20 = vmul.f32 1.442695, %v1003_v6 }
 0x2ed   :  { %v3482_v29 = vpop.eup %2733  ;;  %v950_v34 = vpop.xlane.xlu1 %949  ;;  %1093 = vadd.xlane.f32.xlu1 %v3480_v15 }
 0x2ee   :  { %v952_v60 = vpop.xlane.xlu0 %951  ;;  %2743 = vpow2.f32 %v1041_v30  ;;  %v1004_v5 = vsub.f32 %v3395_v56, %v950_v34  ;;  %1095 = vadd.xlane.f32.xlu0 %v3482_v29 }
 0x2ef   :  { %v1005_v7 = vsub.f32 %v3403_v16, %v952_v60  ;;  %2745 = vpow2.f32 %v1043_v20 }
 0x2f0   :  { %v3488_v46 = vpop.eup %2735  ;;  %v1045_v43 = vmul.f32 1.442695, %v1004_v5 }
 0x2f1   :  { %v1047_v11 = vmul.f32 1.442695, %v1005_v7  ;;  %v3490_v47 = vpop.eup %2737  ;;  %v954_v31 = vpop.xlane.xlu1 %953  ;;  %1097 = vadd.xlane.f32.xlu1 %v3488_v46 }
 0x2f2   :  { %v956_v8 = vpop.xlane.xlu0 %955  ;;  %2747 = vpow2.f32 %v1045_v43  ;;  %v1006_v18 = vsub.f32 %v3401_v27, %v954_v31  ;;  %1099 = vadd.xlane.f32.xlu0 %v3490_v47 }
 0x2f3   :  { %v1007_v56 = vsub.f32 %v3409_v24, %v956_v8  ;;  %2749 = vpow2.f32 %v1047_v11 }
 0x2f4   :  { %v3496_v16 = vpop.eup %2739  ;;  %v1049_v52 = vmul.f32 1.442695, %v1006_v18 }
 0x2f5   :  { %v1051_v59 = vmul.f32 1.442695, %v1007_v56  ;;  %v3498_v40 = vpop.eup %2741  ;;  %v958_v63 = vpop.xlane.xlu1 %957  ;;  %1101 = vadd.xlane.f32.xlu1 %v3496_v16 }
 0x2f6   :  { %v960_v14 = vpop.xlane.xlu0 %959  ;;  %2751 = vpow2.f32 %v1049_v52  ;;  %v1008_v28 = vsub.f32 %v3407_v22, %v958_v63  ;;  %1103 = vadd.xlane.f32.xlu0 %v3498_v40 }
 0x2f7   :  { %v1009_v27 = vsub.f32 %v3415_v32, %v960_v14  ;;  %2753 = vpow2.f32 %v1051_v59 }
 0x2f8   :  { %v3504_v24 = vpop.eup %2743  ;;  %v1053_v42 = vmul.f32 1.442695, %v1008_v28 }
 0x2f9   :  { %v1055_v61 = vmul.f32 1.442695, %v1009_v27  ;;  %v3506_v3 = vpop.eup %2745  ;;  %1105 = vadd.xlane.f32.xlu1 %v3504_v24  ;;  %v962_v9 = vpop.xlane.xlu1 %961 }
 0x2fa   :  { %2755 = vpow2.f32 %v1053_v42  ;;  %v1010_v12 = vsub.f32 %v3413_v25, %v962_v9  ;;  %1107 = vadd.xlane.f32.xlu0 %v3506_v3 }
 0x2fb   :  { %2757 = vpow2.f32 %v1055_v61 }
 0x2fc   :  { %v3511_v22 = vpop.eup %2747  ;;  %v1057_v50 = vmul.f32 1.442695, %v1010_v12 }
 0x2fd   :  { %v3513_v32 = vpop.eup %2749  ;;  %1109 = vadd.xlane.f32.xlu1 %v3511_v22 }
 0x2fe   :  { %2759 = vpow2.f32 %v1057_v50  ;;  %1111 = vadd.xlane.f32.xlu0 %v3513_v32 }
 0x300   :  { %v3517_v48 = vpop.eup %2751 }
 0x301   :  { %v3519_v10 = vpop.eup %2753  ;;  %1113 = vadd.xlane.f32.xlu1 %v3517_v48 }
 0x302   :  { %1115 = vadd.xlane.f32.xlu0 %v3519_v10 }
 0x304   :  { %v3523_v25 = vpop.eup %2755 }
 0x305   :  { %v3525_v55 = vpop.eup %2757  ;;  %1117 = vadd.xlane.f32.xlu1 %v3523_v25 }
 0x306   :  { %1119 = vadd.xlane.f32.xlu0 %v3525_v55 }
 0x308   :  { %v3529_v1 = vpop.eup %2759 }
 0x309   :  { %1121 = vadd.xlane.f32.xlu1 %v3529_v1 }
 0x318   :  { %v966_v6 = vpop.xlane.xlu1 %965 }
 0x319   :  { %v1012_v30 = vsub.f32 %v3420_v26, %v966_v6  ;;  %v964_v20 = vpop.xlane.xlu0 %963 }
 0x31a   :  { %v1011_v34 = vsub.f32 %v3422_v23, %v964_v20 }
 0x31b   :  { %v1061_v60 = vmul.f32 1.442695, %v1012_v30 }
 0x31c   :  { %v1059_v5 = vmul.f32 1.442695, %v1011_v34  ;;  %v970_v7 = vpop.xlane.xlu1 %969 }
 0x31d   :  { %2761 = vpow2.f32 %v1061_v60  ;;  %v1014_v43 = vsub.f32 %v3426_v41, %v970_v7  ;;  %v968_v11 = vpop.xlane.xlu0 %967 }
 0x31e   :  { %2763 = vpow2.f32 %v1059_v5  ;;  %v1013_v31 = vsub.f32 %v3428_v53, %v968_v11 }
 0x31f   :  { %v1065_v8 = vmul.f32 1.442695, %v1014_v43 }
 0x320   :  { %v1063_v18 = vmul.f32 1.442695, %v1013_v31  ;;  %v974_v56 = vpop.xlane.xlu1 %973 }
 0x321   :  { %2765 = vpow2.f32 %v1065_v8  ;;  %v1016_v52 = vsub.f32 %v3432_v62, %v974_v56  ;;  %v972_v26 = vpop.xlane.xlu0 %971 }
 0x322   :  { %2767 = vpow2.f32 %v1063_v18  ;;  %v1015_v23 = vsub.f32 %v3434_v33, %v972_v26 }
 0x323   :  { %v1069_v59 = vmul.f32 1.442695, %v1016_v52 }
 0x324   :  { %v1067_v63 = vmul.f32 1.442695, %v1015_v23  ;;  %v978_v14 = vpop.xlane.xlu1 %977 }
 0x325   :  { %2769 = vpow2.f32 %v1069_v59  ;;  %v1018_v41 = vsub.f32 %v3438_v38, %v978_v14  ;;  %v976_v28 = vpop.xlane.xlu0 %975 }
 0x326   :  { %2771 = vpow2.f32 %v1067_v63  ;;  %v1017_v53 = vsub.f32 %v3440_v44, %v976_v28 }
 0x327   :  { %v3540_v27 = vpop.eup %2761  ;;  %v1073_v42 = vmul.f32 1.442695, %v1018_v41 }
 0x328   :  { %v3542_v61 = vpop.eup %2763  ;;  %v1071_v62 = vmul.f32 1.442695, %v1017_v53  ;;  %1125 = vadd.xlane.f32.xlu1 %v3540_v27  ;;  %v982_v9 = vpop.xlane.xlu1 %981 }
 0x329   :  { %2773 = vpow2.f32 %v1073_v42  ;;  %v1020_v33 = vsub.f32 %v3444_v4, %v982_v9  ;;  %1123 = vadd.xlane.f32.xlu0 %v3542_v61  ;;  %v980_v12 = vpop.xlane.xlu0 %979 }
 0x32a   :  { %2775 = vpow2.f32 %v1071_v62  ;;  %v1019_v38 = vsub.f32 %v3446_v49, %v980_v12 }
 0x32b   :  { %v3548_v50 = vpop.eup %2765  ;;  %v1077_v44 = vmul.f32 1.442695, %v1020_v33 }
 0x32c   :  { %v3550_v6 = vpop.eup %2767  ;;  %v1075_v30 = vmul.f32 1.442695, %v1019_v38  ;;  %1129 = vadd.xlane.f32.xlu1 %v3548_v50  ;;  %v986_v20 = vpop.xlane.xlu1 %985 }
 0x32d   :  { %2777 = vpow2.f32 %v1077_v44  ;;  %v1022_v34 = vsub.f32 %v3450_v0, %v986_v20  ;;  %1127 = vadd.xlane.f32.xlu0 %v3550_v6  ;;  %v984_v4 = vpop.xlane.xlu0 %983 }
 0x32e   :  { %2779 = vpow2.f32 %v1075_v30  ;;  %v1021_v60 = vsub.f32 %v3452_v35, %v984_v4 }
 0x32f   :  { %v3556_v5 = vpop.eup %2769  ;;  %v1081_v49 = vmul.f32 1.442695, %v1022_v34 }
 0x330   :  { %v3558_v7 = vpop.eup %2771  ;;  %v1079_v43 = vmul.f32 1.442695, %v1021_v60  ;;  %1133 = vadd.xlane.f32.xlu1 %v3556_v5  ;;  %v990_v11 = vpop.xlane.xlu1 %989 }
 0x331   :  { %2781 = vpow2.f32 %v1081_v49  ;;  %v1024_v31 = vsub.f32 %v3456_v45, %v990_v11  ;;  %1131 = vadd.xlane.f32.xlu0 %v3558_v7  ;;  %v988_v0 = vpop.xlane.xlu0 %987 }
 0x332   :  { %2783 = vpow2.f32 %v1079_v43  ;;  %v1023_v8 = vsub.f32 %v3458_v58, %v988_v0 }
 0x333   :  { %v3564_v18 = vpop.eup %2773  ;;  %v1085_v35 = vmul.f32 1.442695, %v1024_v31 }
 0x334   :  { %v3566_v56 = vpop.eup %2775  ;;  %v1083_v52 = vmul.f32 1.442695, %v1023_v8  ;;  %1137 = vadd.xlane.f32.xlu1 %v3564_v18  ;;  %v994_v26 = vpop.xlane.xlu1 %993 }
 0x335   :  { %2785 = vpow2.f32 %v1085_v35  ;;  %v1026_v23 = vsub.f32 %v3462_v13, %v994_v26  ;;  %1135 = vadd.xlane.f32.xlu0 %v3566_v56  ;;  %v992_v45 = vpop.xlane.xlu0 %991 }
 0x336   :  { %2787 = vpow2.f32 %v1083_v52  ;;  %v1025_v59 = vsub.f32 %v3464_v57, %v992_v45 }
 0x337   :  { %v3572_v63 = vpop.eup %2777  ;;  %v1089_v58 = vmul.f32 1.442695, %v1026_v23 }
 0x338   :  { %v3574_v14 = vpop.eup %2779  ;;  %v1087_v41 = vmul.f32 1.442695, %v1025_v59  ;;  %1141 = vadd.xlane.f32.xlu1 %v3572_v63 }
 0x339   :  { %2789 = vpow2.f32 %v1089_v58  ;;  %1139 = vadd.xlane.f32.xlu0 %v3574_v14 }
 0x33a   :  { %2791 = vpow2.f32 %v1087_v41 }
 0x33b   :  { %v3578_v28 = vpop.eup %2781 }
 0x33c   :  { %v3580_v13 = vpop.eup %2783  ;;  %1145 = vadd.xlane.f32.xlu1 %v3578_v28 }
 0x33d   :  { %1143 = vadd.xlane.f32.xlu0 %v3580_v13 }
 0x33f   :  { %v3584_v57 = vpop.eup %2785 }
 0x340   :  { %v3586_v53 = vpop.eup %2787  ;;  %1149 = vadd.xlane.f32.xlu1 %v3584_v57 }
 0x341   :  { %1147 = vadd.xlane.f32.xlu0 %v3586_v53 }
 0x343   :  { %v3590_v42 = vpop.eup %2789 }
 0x344   :  { %v3592_v62 = vpop.eup %2791  ;;  %1153 = vadd.xlane.f32.xlu1 %v3590_v42 }
 0x345   :  { %1151 = vadd.xlane.f32.xlu0 %v3592_v62 }
 0x376   :  { %v1092_v9 = vpop.xlane.xlu0 %1091 }
 0x377   :  { %2793 = vrcp.f32 %v1092_v9 }
 0x37a   :  { %v1094_v33 = vpop.xlane.xlu1 %1093 }
 0x37b   :  { %2795 = vrcp.f32 %v1094_v33  ;;  %v1096_v12 = vpop.xlane.xlu0 %1095 }
 0x37c   :  { %2797 = vrcp.f32 %v1096_v12 }
 0x37e   :  { %v1098_v38 = vpop.xlane.xlu1 %1097 }
 0x37f   :  { %2799 = vrcp.f32 %v1098_v38  ;;  %v1100_v44 = vpop.xlane.xlu0 %1099 }
 0x380   :  { %2801 = vrcp.f32 %v1100_v44 }
 0x381   :  { %v2794_v30 = vpop.eup %2793 }
 0x382   :  { %v1102_v20 = vpop.xlane.xlu1 %1101  ;;  %v1187_v34 = vmul.f32 %v2794_v30, %v3475_v37 }
 0x383   :  { %2803 = vrcp.f32 %v1102_v20  ;;  %v1104_v4 = vpop.xlane.xlu0 %1103 }
 0x384   :  { %2805 = vrcp.f32 %v1104_v4  ;;  %2320 = vmatprep.mubr.f32.mxu1 %v1187_v34 }
 0x385   :  { %v2796_v60 = vpop.eup %2795 }
 0x386   :  { %v2798_v49 = vpop.eup %2797  ;;  %v1188_v43 = vmul.f32 %v2796_v60, %v3480_v15  ;;  %v1106_v11 = vpop.xlane.xlu1 %1105 }
 0x387   :  { %2807 = vrcp.f32 %v1106_v11  ;;  %v1108_v31 = vpop.xlane.xlu0 %1107  ;;  %v1189_v0 = vmul.f32 %v2798_v49, %v3482_v29 }
 0x388   :  { %2809 = vrcp.f32 %v1108_v31  ;;  %2321 = vmatmul.mubr.f32.vlgmr.msra.gmra.mrb[64].mxu1 %v1188_v43 }
 0x389   :  { %v2800_v8 = vpop.eup %2799  ;;  %2643 = vmatpush3.bf16.msra.mxu1 %v3244_v54  ;;  %2323 = vmatprep.mubr.f32.mxu1 %v1189_v0 }
 0x38a   :  { %v2802_v37 = vpop.eup %2801  ;;  %2645 = vmatprep.subr.bf16.mxu1 %v3256_v21  ;;  %v1110_v35 = vpop.xlane.xlu1 %1109  ;;  %v1190_v52 = vmul.f32 %v2800_v8, %v3488_v46 }
 0x38b   :  { %2811 = vrcp.f32 %v1110_v35  ;;  %v1112_v26 = vpop.xlane.xlu0 %1111  ;;  %v1191_v15 = vmul.f32 %v2802_v37, %v3490_v47 }
 0x38c   :  { %2813 = vrcp.f32 %v1112_v26  ;;  %2324 = vmatmul.mubr.f32.gmra.mrb[66].mxu1 %v1190_v52 }
 0x38d   :  { %v2804_v23 = vpop.eup %2803  ;;  %2647 = vmatpush3.bf16.msra.mxu1 %v3256_v21  ;;  %2326 = vmatprep.mubr.f32.mxu1 %v1191_v15 }
 0x38e   :  { %v2806_v29 = vpop.eup %2805  ;;  %2649 = vmatprep.subr.bf16.mxu1 %v3267_v36  ;;  %v1114_v54 = vpop.xlane.xlu1 %1113  ;;  %v1192_v45 = vmul.f32 %v2804_v23, %v3496_v16 }
 0x38f   :  { %2815 = vrcp.f32 %v1114_v54  ;;  %v1116_v59 = vpop.xlane.xlu0 %1115  ;;  %v1193_v46 = vmul.f32 %v2806_v29, %v3498_v40 }
 0x390   :  { %2817 = vrcp.f32 %v1116_v59  ;;  %2327 = vmatmul.mubr.f32.gmra.mrb[68].mxu1 %v1192_v45 }
 0x391   :  { %v2808_v58 = vpop.eup %2807  ;;  %2651 = vmatpush3.bf16.msra.mxu1 %v3267_v36  ;;  %2329 = vmatprep.mubr.f32.mxu1 %v1193_v46 }
 0x392   :  { %v2810_v47 = vpop.eup %2809  ;;  %2653 = vmatprep.subr.bf16.mxu1 %v3281_v2  ;;  %v1118_v21 = vpop.xlane.xlu1 %1117  ;;  %v1194_v41 = vmul.f32 %v2808_v58, %v3504_v24 }
 0x393   :  { %2819 = vrcp.f32 %v1118_v21  ;;  %v1120_v9 = vpop.xlane.xlu0 %1119  ;;  %v1195_v16 = vmul.f32 %v2810_v47, %v3506_v3 }
 0x394   :  { %2821 = vrcp.f32 %v1120_v9  ;;  %2330 = vmatmul.mubr.f32.gmra.mrb[70].mxu1 %v1194_v41 }
 0x395   :  { %v2812_v33 = vpop.eup %2811  ;;  %2655 = vmatpush3.bf16.msra.mxu1 %v3281_v2  ;;  %2332 = vmatprep.mubr.f32.mxu1 %v1195_v16 }
 0x396   :  { %v2814_v40 = vpop.eup %2813  ;;  %2657 = vmatprep.subr.bf16.mxu1 %v3293_v19  ;;  %v1122_v36 = vpop.xlane.xlu1 %1121  ;;  %v1196_v12 = vmul.f32 %v2812_v33, %v3511_v22 }
 0x397   :  { %2823 = vrcp.f32 %v1122_v36  ;;  %v1197_v38 = vmul.f32 %v2814_v40, %v3513_v32 }
 0x398   :  { %2333 = vmatmul.mubr.f32.gmra.mrb[72].mxu1 %v1196_v12 }
 0x399   :  { %v2816_v24 = vpop.eup %2815  ;;  %2659 = vmatpush3.bf16.msra.mxu1 %v3293_v19  ;;  %2335 = vmatprep.mubr.f32.mxu1 %v1197_v38 }
 0x39a   :  { %v2818_v3 = vpop.eup %2817  ;;  %2661 = vmatprep.subr.bf16.mxu1 %v3305_v39  ;;  %v1198_v2 = vmul.f32 %v2816_v24, %v3517_v48  ;;  %v1573_v24 = vld [vmem:[#allocation7] sm:$0xff] }
 0x39b   :  { %v1199_v44 = vmul.f32 %v2818_v3, %v3519_v10  ;;  %v1574_v3 = vld [vmem:[#allocation7 + $0x8] sm:$0xff] }
 0x39c   :  { %2336 = vmatmul.mubr.f32.gmra.mrb[74].mxu1 %v1198_v2  ;;  %v2672_v2 = vpack.c.bf16 %v1574_v3, %v1573_v24 }
 0x39d   :  { %v2820_v30 = vpop.eup %2819  ;;  %2663 = vmatpush3.bf16.msra.mxu1 %v3305_v39  ;;  %2338 = vmatprep.mubr.f32.mxu1 %v1199_v44 }
 0x39e   :  { %v2822_v22 = vpop.eup %2821  ;;  %2665 = vmatprep.subr.bf16.mxu1 %v3315_v51  ;;  %v1200_v32 = vmul.f32 %v2820_v30, %v3523_v25  ;;  %2673 = vmatprep.subr.bf16.mxu0 %v2672_v2  ;;  %v1576_v30 = vld [vmem:[#allocation7 + $0x18] sm:$0xff] }
 0x39f   :  { %v1201_v19 = vmul.f32 %v2822_v22, %v3525_v55  ;;  %2675 = vmatpush3.bf16.msra.mxu0 %v2672_v2 }
 0x3a0   :  { %2339 = vmatmul.mubr.f32.gmra.mrb[76].mxu1 %v1200_v32 }
 0x3a1   :  { %v2824_v20 = vpop.eup %2823  ;;  %2667 = vmatpush3.bf16.msra.mxu1 %v3315_v51  ;;  %2341 = vmatprep.mubr.f32.mxu1 %v1201_v19  ;;  %v1578_v19 = vld [vmem:[#allocation7 + $0x28] sm:$0xff] }
 0x3a2   :  { %2669 = vmatprep.subr.bf16.mxu1 %v3327_v17  ;;  %v1202_v48 = vmul.f32 %v2824_v20, %v3529_v1 }
 0x3a4   :  { %2342 = vmatmul.mubr.f32.gmra.mrb[78].mxu1 %v1202_v48 }
 0x3a5   :  { %2671 = vmatpush3.bf16.msra.mxu1 %v3327_v17 }
 0x3b5   :  { %v1126_v39 = vpop.xlane.xlu1 %1125 }
 0x3b6   :  { %2825 = vrcp.f32 %v1126_v39  ;;  %v1124_v10 = vpop.xlane.xlu0 %1123 }
 0x3b7   :  { %2827 = vrcp.f32 %v1124_v10  ;;  %v1579_v10 = vld [vmem:[#allocation7 + $0x30] sm:$0xff] }
 0x3b9   :  { %v1130_v34 = vpop.xlane.xlu1 %1129 }
 0x3ba   :  { %2829 = vrcp.f32 %v1130_v34  ;;  %v1128_v25 = vpop.xlane.xlu0 %1127  ;;  %v1580_v34 = vld [vmem:[#allocation7 + $0x38] sm:$0xff] }
 0x3bb   :  { %2831 = vrcp.f32 %v1128_v25  ;;  %v2684_v25 = vpack.c.bf16 %v1580_v34, %v1579_v10 }
 0x3bd   :  { %v1134_v55 = vpop.xlane.xlu1 %1133 }
 0x3be   :  { %2833 = vrcp.f32 %v1134_v55  ;;  %v1132_v4 = vpop.xlane.xlu0 %1131 }
 0x3bf   :  { %2835 = vrcp.f32 %v1132_v4 }
 0x3c0   :  { %v2826_v51 = vpop.eup %2825 }
 0x3c1   :  { %v2828_v60 = vpop.eup %2827  ;;  %v1138_v49 = vpop.xlane.xlu1 %1137  ;;  %v1204_v17 = vmul.f32 %v2826_v51, %v3540_v27  ;;  %v1581_v51 = vld [vmem:[#allocation7 + $0x40] sm:$0xff] }
 0x3c2   :  { %2837 = vrcp.f32 %v1138_v49  ;;  %v1136_v1 = vpop.xlane.xlu0 %1135  ;;  %v1203_v43 = vmul.f32 %v2828_v60, %v3542_v61  ;;  %v1582_v60 = vld [vmem:[#allocation7 + $0x48] sm:$0xff] }
 0x3c3   :  { %2839 = vrcp.f32 %v1136_v1  ;;  %v2688_v49 = vpack.c.bf16 %v1582_v60, %v1581_v51 }
 0x3c4   :  { %v2830_v11 = vpop.eup %2829  ;;  %2376 = vmatprep.mubr.f32.mxu1 %v1203_v43 }
 0x3c5   :  { %v2832_v31 = vpop.eup %2831  ;;  %v1142_v0 = vpop.xlane.xlu1 %1141  ;;  %2377 = vmatmul.mubr.f32.vlgmr.msra.gmra.mrb[80].mxu1 %v1204_v17  ;;  %v1206_v35 = vmul.f32 %v2830_v11, %v3548_v50  ;;  %v1583_v17 = vld [vmem:[#allocation7 + $0x50] sm:$0xff]  ;;  %v1584_v11 = vld [vmem:[#allocation7 + $0x58] sm:$0xff] }
 0x3c6   :  { %2841 = vrcp.f32 %v1142_v0  ;;  %v1140_v8 = vpop.xlane.xlu0 %1139  ;;  %v1205_v37 = vmul.f32 %v2832_v31, %v3550_v6  ;;  %v2692_v31 = vpack.c.bf16 %v1584_v11, %v1583_v17 }
 0x3c7   :  { %2843 = vrcp.f32 %v1140_v8 }
 0x3c8   :  { %v2834_v52 = vpop.eup %2833  ;;  %2379 = vmatprep.mubr.f32.mxu1 %v1205_v37  ;;  %v1585_v37 = vld [vmem:[#allocation7 + $0x60] sm:$0xff] }
 0x3c9   :  { %v2836_v26 = vpop.eup %2835  ;;  %v1146_v15 = vpop.xlane.xlu1 %1145  ;;  %2380 = vmatmul.mubr.f32.gmra.mrb[82].mxu1 %v1206_v35  ;;  %v1208_v23 = vmul.f32 %v2834_v52, %v3556_v5  ;;  %v1586_v35 = vld [vmem:[#allocation7 + $0x68] sm:$0xff] }
 0x3ca   :  { %2845 = vrcp.f32 %v1146_v15  ;;  %v1144_v27 = vpop.xlane.xlu0 %1143  ;;  %v1207_v61 = vmul.f32 %v2836_v26, %v3558_v7  ;;  %v2696_v52 = vpack.c.bf16 %v1586_v35, %v1585_v37 }
 0x3cb   :  { %2847 = vrcp.f32 %v1144_v27  ;;  %v1587_v27 = vld [vmem:[#allocation7 + $0x70] sm:$0xff] }
 0x3cc   :  { %v2838_v29 = vpop.eup %2837  ;;  %2382 = vmatprep.mubr.f32.mxu1 %v1207_v61  ;;  %v1588_v61 = vld [vmem:[#allocation7 + $0x78] sm:$0xff] }
 0x3cd   :  { %v2840_v54 = vpop.eup %2839  ;;  %v1150_v45 = vpop.xlane.xlu1 %1149  ;;  %2383 = vmatmul.mubr.f32.gmra.mrb[84].mxu1 %v1208_v23  ;;  %v1210_v59 = vmul.f32 %v2838_v29, %v3564_v18  ;;  %v2700_v23 = vpack.c.bf16 %v1588_v61, %v1587_v27 }
 0x3ce   :  { %2849 = vrcp.f32 %v1150_v45  ;;  %v1148_v6 = vpop.xlane.xlu0 %1147  ;;  %v1209_v50 = vmul.f32 %v2840_v54, %v3566_v56 }
 0x3cf   :  { %2851 = vrcp.f32 %v1148_v6 }
 0x3d0   :  { %v2842_v46 = vpop.eup %2841  ;;  %2385 = vmatprep.mubr.f32.mxu1 %v1209_v50 }
 0x3d1   :  { %v2844_v58 = vpop.eup %2843  ;;  %v1154_v47 = vpop.xlane.xlu1 %1153  ;;  %2386 = vmatmul.mubr.f32.gmra.mrb[86].mxu1 %v1210_v59  ;;  %v1212_v21 = vmul.f32 %v2842_v46, %v3572_v63 }
 0x3d2   :  { %2853 = vrcp.f32 %v1154_v47  ;;  %v1152_v7 = vpop.xlane.xlu0 %1151  ;;  %v1211_v5 = vmul.f32 %v2844_v58, %v3574_v14 }
 0x3d3   :  { %2855 = vrcp.f32 %v1152_v7 }
 0x3d4   :  { %v2846_v41 = vpop.eup %2845  ;;  %2388 = vmatprep.mubr.f32.mxu1 %v1211_v5 }
 0x3d5   :  { %v2848_v9 = vpop.eup %2847  ;;  %2389 = vmatmul.mubr.f32.gmra.mrb[88].mxu1 %v1212_v21  ;;  %v1214_v18 = vmul.f32 %v2846_v41, %v3578_v28 }
 0x3d6   :  { %v1213_v56 = vmul.f32 %v2848_v9, %v3580_v13 }
 0x3d8   :  { %v2850_v16 = vpop.eup %2849  ;;  %2391 = vmatprep.mubr.f32.mxu1 %v1213_v56 }
 0x3d9   :  { %v2852_v33 = vpop.eup %2851  ;;  %2392 = vmatmul.mubr.f32.gmra.mrb[90].mxu1 %v1214_v18  ;;  %v1216_v36 = vmul.f32 %v2850_v16, %v3584_v57  ;;  %v1575_v57 = vld [vmem:[#allocation7 + $0x10] sm:$0xff] }
 0x3da   :  { %v1215_v40 = vmul.f32 %v2852_v33, %v3586_v53  ;;  %v2676_v22 = vpack.c.bf16 %v1576_v30, %v1575_v57 }
 0x3dc   :  { %v2854_v14 = vpop.eup %2853  ;;  %2394 = vmatprep.mubr.f32.mxu1 %v1215_v40  ;;  %2677 = vmatprep.subr.bf16.mxu0 %v2676_v22 }
 0x3dd   :  { %v2856_v12 = vpop.eup %2855  ;;  %2395 = vmatmul.mubr.f32.gmra.mrb[92].mxu1 %v1216_v36  ;;  %v1218_v38 = vmul.f32 %v2854_v14, %v3590_v42  ;;  %2679 = vmatpush3.bf16.msra.mxu0 %v2676_v22  ;;  %v1577_v42 = vld [vmem:[#allocation7 + $0x20] sm:$0xff] }
 0x3de   :  { %v1217_v63 = vmul.f32 %v2856_v12, %v3592_v62  ;;  %v2680_v20 = vpack.c.bf16 %v1578_v19, %v1577_v42 }
 0x3e0   :  { %2397 = vmatprep.mubr.f32.mxu1 %v1217_v63  ;;  %2681 = vmatprep.subr.bf16.mxu0 %v2680_v20 }
 0x3e1   :  { %2398 = vmatmul.mubr.f32.gmra.mrb[94].mxu1 %v1218_v38  ;;  %2683 = vmatpush3.bf16.msra.mxu0 %v2680_v20 }
 0x3e2   :  { %2685 = vmatprep.subr.bf16.mxu0 %v2684_v25 }
 0x3e5   :  { %2687 = vmatpush3.bf16.msra.mxu0 %v2684_v25 }
 0x3e6   :  { %2689 = vmatprep.subr.bf16.mxu0 %v2688_v49 }
 0x3e9   :  { %2691 = vmatpush3.bf16.msra.mxu0 %v2688_v49  ;;  %v3646_v49 = vld [vmem:[%s3699_s4] ss:$0 sm:$0xff]  ;;  %s2959_s4 = smov [#allocation8]  }
 0x3ea   :  { %2693 = vmatprep.subr.bf16.mxu0 %v2692_v31  ;;  %s1858_s8 = sshll.u32 %s2959_s4, 4  ;;  %s1859_s8 = int_to_ptr.vmem [resolvable:$true] %s1858_s8 }
 0x3eb   :  { %s2923_s9 = scalar_lea.vmem %s1859_s8, 4096  ;;  %p2928_p11 = scmp.lt.s32.totalorder %s1859_s8, %s1859_s8 }
 0x3ec   :  { %p2924_p10 = scmp.ne.s32.totalorder %s1859_s8, %s2923_s9  ;;  %p2929_p12 = scmp.lt.s32.totalorder %s2923_s9, %s2923_s9 }
 0x3ed   :  { %2695 = vmatpush3.bf16.msra.mxu0 %v2692_v31 }
 0x3ee   :  { %2697 = vmatprep.subr.bf16.mxu0 %v2696_v52  ;;  %p2930_p13 = por %p2929_p12, %p2928_p11 }
 0x3f0   :  { %p2931_p0 = pnand %p2930_p13, %p2924_p10 }
 0x3f1   :  { %2699 = vmatpush3.bf16.msra.mxu0 %v2696_v52 }
 0x3f2   :  { %2701 = vmatprep.subr.bf16.mxu0 %v2700_v23 }
 0x3f5   :  { %2703 = vmatpush3.bf16.msra.mxu0 %v2700_v23 }
 0x45b   :  { %v2322_v13 = vpop.f32.mrb[64].mxu1 }
 0x45c   :  { %v1285_v28 = vpop.f32.mrb[65].mxu1 }
 0x45d   :  { %1509 = vxpose.xlu0.b32.start [1/16] %v1285_v28, 128 }
 0x45f   :  { %v2325_v44 = vpop.f32.mrb[66].mxu1 }
 0x460   :  { %v1295_v53 = vpop.f32.mrb[67].mxu1 }
 0x461   :  { %1510 = vxpose.xlu0.b32.cont [2/16] %v2322_v13, 128 }
 0x463   :  { %v2328_v32 = vpop.f32.mrb[68].mxu1 }
 0x464   :  { %v1305_v62 = vpop.f32.mrb[69].mxu1 }
 0x465   :  { %1511 = vxpose.xlu0.b32.cont [3/16] %v1295_v53, 128 }
 0x467   :  { %v2331_v48 = vpop.f32.mrb[70].mxu1 }
 0x468   :  { %v1315_v39 = vpop.f32.mrb[71].mxu1 }
 0x469   :  { %1512 = vxpose.xlu0.b32.cont [4/16] %v2325_v44, 128 }
 0x46b   :  { %v2334_v55 = vpop.f32.mrb[72].mxu1 }
 0x46c   :  { %v1325_v4 = vpop.f32.mrb[73].mxu1 }
 0x46d   :  { %1513 = vxpose.xlu0.b32.cont [5/16] %v1305_v62, 128 }
 0x46f   :  { %v2337_v1 = vpop.f32.mrb[74].mxu1 }
 0x470   :  { %v1335_v43 = vpop.f32.mrb[75].mxu1 }
 0x471   :  { %1514 = vxpose.xlu0.b32.cont [6/16] %v2328_v32, 128 }
 0x473   :  { %v2340_v0 = vpop.f32.mrb[76].mxu1 }
 0x474   :  { %v1345_v8 = vpop.f32.mrb[77].mxu1 }
 0x475   :  { %1515 = vxpose.xlu0.b32.cont [7/16] %v1315_v39, 128 }
 0x477   :  { %v2343_v26 = vpop.f32.mrb[78].mxu1 }
 0x478   :  { %v1355_v15 = vpop.f32.mrb[79].mxu1 }
 0x479   :  { %1516 = vxpose.xlu0.b32.cont [8/16] %v2331_v48, 128 }
 0x47d   :  { %1517 = vxpose.xlu0.b32.cont [9/16] %v1325_v4, 128 }
 0x481   :  { %1518 = vxpose.xlu0.b32.cont [10/16] %v2334_v55, 128 }
 0x485   :  { %1519 = vxpose.xlu0.b32.cont [11/16] %v1335_v43, 128 }
 0x489   :  { %1520 = vxpose.xlu0.b32.cont [12/16] %v2337_v1, 128 }
 0x48d   :  { %1521 = vxpose.xlu0.b32.cont [13/16] %v1345_v8, 128 }
 0x491   :  { %1522 = vxpose.xlu0.b32.cont [14/16] %v2340_v0, 128 }
 0x495   :  { %1523 = vxpose.xlu0.b32.cont [15/16] %v1355_v15, 128 }
 0x498   :  { %v2378_v29 = vpop.f32.mrb[80].mxu1 }
 0x499   :  { %1524 = vxpose.xlu0.b32.end [16/16] %v2343_v26, 128  ;;  %v1430_v54 = vpop.f32.mrb[81].mxu1 }
 0x49a   :  { %1541 = vxpose.xlu1.b32.start [1/16] %v1430_v54, 128 }
 0x49c   :  { %v2381_v45 = vpop.f32.mrb[82].mxu1 }
 0x49d   :  { %v1440_v6 = vpop.f32.mrb[83].mxu1 }
 0x49e   :  { %1542 = vxpose.xlu1.b32.cont [2/16] %v2378_v29, 128 }
 0x4a0   :  { %v2384_v50 = vpop.f32.mrb[84].mxu1 }
 0x4a1   :  { %v1450_v59 = vpop.f32.mrb[85].mxu1 }
 0x4a2   :  { %1543 = vxpose.xlu1.b32.cont [3/16] %v1440_v6, 128 }
 0x4a4   :  { %v2387_v46 = vpop.f32.mrb[86].mxu1 }
 0x4a5   :  { %v1460_v58 = vpop.f32.mrb[87].mxu1 }
 0x4a6   :  { %1544 = vxpose.xlu1.b32.cont [4/16] %v2381_v45, 128 }
 0x4a8   :  { %v2390_v47 = vpop.f32.mrb[88].mxu1 }
 0x4a9   :  { %v1470_v7 = vpop.f32.mrb[89].mxu1 }
 0x4aa   :  { %1545 = vxpose.xlu1.b32.cont [5/16] %v1450_v59, 128 }
 0x4ac   :  { %v2393_v5 = vpop.f32.mrb[90].mxu1 }
 0x4ad   :  { %v1480_v21 = vpop.f32.mrb[91].mxu1 }
 0x4ae   :  { %1546 = vxpose.xlu1.b32.cont [6/16] %v2384_v50, 128 }
 0x4b0   :  { %v2396_v41 = vpop.f32.mrb[92].mxu1 }
 0x4b1   :  { %v1490_v9 = vpop.f32.mrb[93].mxu1 }
 0x4b2   :  { %1547 = vxpose.xlu1.b32.cont [7/16] %v1460_v58, 128 }
 0x4b4   :  { %v2399_v56 = vpop.f32.mrb[94].mxu1 }
 0x4b5   :  { %v1500_v18 = vpop.f32.mrb[95].mxu1 }
 0x4b6   :  { %1548 = vxpose.xlu1.b32.cont [8/16] %v2387_v46, 128 }
 0x4ba   :  { %1549 = vxpose.xlu1.b32.cont [9/16] %v1470_v7, 128 }
 0x4be   :  { %1550 = vxpose.xlu1.b32.cont [10/16] %v2390_v47, 128 }
 0x4c2   :  { %1551 = vxpose.xlu1.b32.cont [11/16] %v1480_v21, 128 }
 0x4c6   :  { %1552 = vxpose.xlu1.b32.cont [12/16] %v2393_v5, 128 }
 0x4ca   :  { %1553 = vxpose.xlu1.b32.cont [13/16] %v1490_v9, 128 }
 0x4ce   :  { %1554 = vxpose.xlu1.b32.cont [14/16] %v2396_v41, 128 }
 0x4d2   :  { %1555 = vxpose.xlu1.b32.cont [15/16] %v1500_v18, 128 }
 0x4d6   :  { %1556 = vxpose.xlu1.b32.end [16/16] %v2399_v56, 128 }
 0x4dd   :  { %v1525_v16 = vpop.trf.xlu0 }
 0x4de   :  { %2432 = vmatprep.mubr.f32.mxu0 %v1525_v16 }
 0x4e1   :  { %v1526_v33 = vpop.trf.xlu0 }
 0x4e2   :  { %2433 = vmatmul.mubr.f32.vlgmr.msra.gmra.mrb[64].mxu0 %v1526_v33 }
 0x4e5   :  { %v1527_v40 = vpop.trf.xlu0 }
 0x4e6   :  { %2435 = vmatprep.mubr.f32.mxu0 %v1527_v40 }
 0x4e9   :  { %v1528_v36 = vpop.trf.xlu0 }
 0x4ea   :  { %2436 = vmatmul.mubr.f32.gmra.mrb[66].mxu0 %v1528_v36 }
 0x4ed   :  { %v1529_v14 = vpop.trf.xlu0 }
 0x4ee   :  { %2438 = vmatprep.mubr.f32.mxu0 %v1529_v14 }
 0x4f1   :  { %v1530_v12 = vpop.trf.xlu0 }
 0x4f2   :  { %2439 = vmatmul.mubr.f32.gmra.mrb[68].mxu0 %v1530_v12 }
 0x4f5   :  { %v1531_v63 = vpop.trf.xlu0 }
 0x4f6   :  { %2441 = vmatprep.mubr.f32.mxu0 %v1531_v63 }
 0x4f9   :  { %v1532_v38 = vpop.trf.xlu0 }
 0x4fa   :  { %2442 = vmatmul.mubr.f32.gmra.mrb[70].mxu0 %v1532_v38 }
 0x4fd   :  { %v1533_v13 = vpop.trf.xlu0 }
 0x4fe   :  { %2444 = vmatprep.mubr.f32.mxu0 %v1533_v13 }
 0x501   :  { %v1534_v28 = vpop.trf.xlu0 }
 0x502   :  { %2445 = vmatmul.mubr.f32.gmra.mrb[72].mxu0 %v1534_v28 }
 0x505   :  { %v1535_v24 = vpop.trf.xlu0 }
 0x506   :  { %2447 = vmatprep.mubr.f32.mxu0 %v1535_v24 }
 0x509   :  { %v1536_v3 = vpop.trf.xlu0 }
 0x50a   :  { %2448 = vmatmul.mubr.f32.gmra.mrb[74].mxu0 %v1536_v3 }
 0x50d   :  { %v1537_v2 = vpop.trf.xlu0 }
 0x50e   :  { %2450 = vmatprep.mubr.f32.mxu0 %v1537_v2 }
 0x511   :  { %v1538_v44 = vpop.trf.xlu0 }
 0x512   :  { %2451 = vmatmul.mubr.f32.gmra.mrb[76].mxu0 %v1538_v44 }
 0x515   :  { %v1539_v53 = vpop.trf.xlu0 }
 0x516   :  { %2453 = vmatprep.mubr.f32.mxu0 %v1539_v53 }
 0x519   :  { %v1540_v57 = vpop.trf.xlu0 }
 0x51a   :  { %v1557_v30 = vpop.trf.xlu1  ;;  %2454 = vmatmul.mubr.f32.gmra.mrb[78].mxu0 %v1540_v57 }
 0x51b   :  { %2456 = vmatprep.mubr.f32.mxu0 %v1557_v30 }
 0x51e   :  { %v1558_v22 = vpop.trf.xlu1 }
 0x51f   :  { %2457 = vmatmul.mubr.f32.gmra.mrb[80].mxu0 %v1558_v22 }
 0x522   :  { %v1559_v32 = vpop.trf.xlu1 }
 0x523   :  { %2459 = vmatprep.mubr.f32.mxu0 %v1559_v32 }
 0x526   :  { %v1560_v62 = vpop.trf.xlu1 }
 0x527   :  { %2460 = vmatmul.mubr.f32.gmra.mrb[82].mxu0 %v1560_v62 }
 0x52a   :  { %v1561_v42 = vpop.trf.xlu1 }
 0x52b   :  { %2462 = vmatprep.mubr.f32.mxu0 %v1561_v42 }
 0x52e   :  { %v1562_v19 = vpop.trf.xlu1 }
 0x52f   :  { %2463 = vmatmul.mubr.f32.gmra.mrb[84].mxu0 %v1562_v19 }
 0x532   :  { %v1563_v20 = vpop.trf.xlu1 }
 0x533   :  { %2465 = vmatprep.mubr.f32.mxu0 %v1563_v20 }
 0x536   :  { %v1564_v48 = vpop.trf.xlu1 }
 0x537   :  { %2466 = vmatmul.mubr.f32.gmra.mrb[86].mxu0 %v1564_v48 }
 0x53a   :  { %v1565_v39 = vpop.trf.xlu1 }
 0x53b   :  { %2468 = vmatprep.mubr.f32.mxu0 %v1565_v39 }
 0x53e   :  { %v1566_v10 = vpop.trf.xlu1 }
 0x53f   :  { %2469 = vmatmul.mubr.f32.gmra.mrb[88].mxu0 %v1566_v10 }
 0x542   :  { %v1567_v34 = vpop.trf.xlu1 }
 0x543   :  { %2471 = vmatprep.mubr.f32.mxu0 %v1567_v34 }
 0x546   :  { %v1568_v25 = vpop.trf.xlu1 }
 0x547   :  { %2472 = vmatmul.mubr.f32.gmra.mrb[90].mxu0 %v1568_v25 }
 0x54a   :  { %v1569_v55 = vpop.trf.xlu1 }
 0x54b   :  { %2474 = vmatprep.mubr.f32.mxu0 %v1569_v55 }
 0x54e   :  { %v1570_v4 = vpop.trf.xlu1 }
 0x54f   :  { %2475 = vmatmul.mubr.f32.gmra.mrb[92].mxu0 %v1570_v4 }
 0x552   :  { %v1571_v51 = vpop.trf.xlu1 }
 0x553   :  { %2477 = vmatprep.mubr.f32.mxu0 %v1571_v51 }
 0x556   :  { %v1572_v60 = vpop.trf.xlu1 }
 0x557   :  { %2478 = vmatmul.mubr.f32.gmra.mrb[94].mxu0 %v1572_v60 }
 0x5b5   :  { %v2434_v1 = vpop.f32.mrb[64].mxu0 }
 0x5b6   :  { %v1668_v43 = vadd.f32 %v2434_v1, %v3646_v49  ;;  %v1662_v17 = vpop.f32.mrb[65].mxu0 }
 0x5b7   :  { %v1663_v11 = vadd.f32 %v3646_v49, %v1662_v17 }
 0x5b8   :  { %1822 = vst [vmem:[#allocation8 + $0x8] sm:$0xff] %v1668_v43 }
 0x5b9   :  { %1821 = vst [vmem:[#allocation8] sm:$0xff] %v1663_v11 }
 0x5bd   :  { %v2437_v31 = vpop.f32.mrb[66].mxu0 }
 0x5be   :  { %v1678_v0 = vadd.f32 %v2437_v31, %v3646_v49  ;;  %v1672_v8 = vpop.f32.mrb[67].mxu0 }
 0x5bf   :  { %v1673_v37 = vadd.f32 %v3646_v49, %v1672_v8 }
 0x5c0   :  { %1824 = vst [vmem:[#allocation8 + $0x18] sm:$0xff] %v1678_v0 }
 0x5c1   :  { %1823 = vst [vmem:[#allocation8 + $0x10] sm:$0xff] %v1673_v37 }
 0x5c5   :  { %v2440_v35 = vpop.f32.mrb[68].mxu0 }
 0x5c6   :  { %v1688_v52 = vadd.f32 %v2440_v35, %v3646_v49  ;;  %v1682_v26 = vpop.f32.mrb[69].mxu0 }
 0x5c7   :  { %v1683_v15 = vadd.f32 %v3646_v49, %v1682_v26 }
 0x5c8   :  { %1826 = vst [vmem:[#allocation8 + $0x28] sm:$0xff] %v1688_v52 }
 0x5c9   :  { %1825 = vst [vmem:[#allocation8 + $0x20] sm:$0xff] %v1683_v15 }
 0x5cd   :  { %v2443_v27 = vpop.f32.mrb[70].mxu0 }
 0x5ce   :  { %v1698_v61 = vadd.f32 %v2443_v27, %v3646_v49  ;;  %v1692_v23 = vpop.f32.mrb[71].mxu0 }
 0x5cf   :  { %v1693_v29 = vadd.f32 %v3646_v49, %v1692_v23 }
 0x5d0   :  { %1828 = vst [vmem:[#allocation8 + $0x38] sm:$0xff] %v1698_v61 }
 0x5d1   :  { %1827 = vst [vmem:[#allocation8 + $0x30] sm:$0xff] %v1693_v29 }
 0x5d5   :  { %v2446_v54 = vpop.f32.mrb[72].mxu0 }
 0x5d6   :  { %v1708_v45 = vadd.f32 %v2446_v54, %v3646_v49  ;;  %v1702_v6 = vpop.f32.mrb[73].mxu0 }
 0x5d7   :  { %v1703_v50 = vadd.f32 %v3646_v49, %v1702_v6 }
 0x5d8   :  { %1830 = vst [vmem:[#allocation8 + $0x48] sm:$0xff] %v1708_v45 }
 0x5d9   :  { %1829 = vst [vmem:[#allocation8 + $0x40] sm:$0xff] %v1703_v50 }
 0x5dd   :  { %v2449_v59 = vpop.f32.mrb[74].mxu0 }
 0x5de   :  { %v1718_v46 = vadd.f32 %v2449_v59, %v3646_v49  ;;  %v1712_v58 = vpop.f32.mrb[75].mxu0 }
 0x5df   :  { %v1713_v47 = vadd.f32 %v3646_v49, %v1712_v58 }
 0x5e0   :  { %1832 = vst [vmem:[#allocation8 + $0x58] sm:$0xff] %v1718_v46 }
 0x5e1   :  { %1831 = vst [vmem:[#allocation8 + $0x50] sm:$0xff] %v1713_v47 }
 0x5e5   :  { %v2452_v7 = vpop.f32.mrb[76].mxu0 }
 0x5e6   :  { %v1728_v5 = vadd.f32 %v2452_v7, %v3646_v49  ;;  %v1722_v21 = vpop.f32.mrb[77].mxu0 }
 0x5e7   :  { %v1723_v41 = vadd.f32 %v3646_v49, %v1722_v21 }
 0x5e8   :  { %1834 = vst [vmem:[#allocation8 + $0x68] sm:$0xff] %v1728_v5 }
 0x5e9   :  { %1833 = vst [vmem:[#allocation8 + $0x60] sm:$0xff] %v1723_v41 }
 0x5ed   :  { %v2455_v9 = vpop.f32.mrb[78].mxu0 }
 0x5ee   :  { %v1738_v56 = vadd.f32 %v2455_v9, %v3646_v49  ;;  %v1732_v18 = vpop.f32.mrb[79].mxu0 }
 0x5ef   :  { %v1733_v16 = vadd.f32 %v3646_v49, %v1732_v18 }
 0x5f0   :  { %1836 = vst [vmem:[#allocation8 + $0x78] sm:$0xff] %v1738_v56 }
 0x5f1   :  { %1835 = vst [vmem:[#allocation8 + $0x70] sm:$0xff] %v1733_v16 }
 0x5f2   :  { %v2458_v33 = vpop.f32.mrb[80].mxu0 }
 0x5f3   :  { %v1748_v40 = vadd.f32 %v2458_v33, %v3646_v49  ;;  %v1742_v36 = vpop.f32.mrb[81].mxu0 }
 0x5f4   :  { %v1743_v14 = vadd.f32 %v3646_v49, %v1742_v36 }
 0x5f5   :  { %1838 = vst [vmem:[#allocation8 + $0x88] sm:$0xff] %v1748_v40 }
 0x5f6   :  { %1837 = vst [vmem:[#allocation8 + $0x80] sm:$0xff] %v1743_v14 }
 0x5fa   :  { %v2461_v12 = vpop.f32.mrb[82].mxu0 }
 0x5fb   :  { %v1758_v63 = vadd.f32 %v2461_v12, %v3646_v49  ;;  %v1752_v38 = vpop.f32.mrb[83].mxu0 }
 0x5fc   :  { %v1753_v13 = vadd.f32 %v3646_v49, %v1752_v38 }
 0x5fd   :  { %1840 = vst [vmem:[#allocation8 + $0x98] sm:$0xff] %v1758_v63 }
 0x5fe   :  { %1839 = vst [vmem:[#allocation8 + $0x90] sm:$0xff] %v1753_v13 }
 0x602   :  { %v2464_v28 = vpop.f32.mrb[84].mxu0 }
 0x603   :  { %v1768_v24 = vadd.f32 %v2464_v28, %v3646_v49  ;;  %v1762_v3 = vpop.f32.mrb[85].mxu0 }
 0x604   :  { %v1763_v2 = vadd.f32 %v3646_v49, %v1762_v3 }
 0x605   :  { %1842 = vst [vmem:[#allocation8 + $0xa8] sm:$0xff] %v1768_v24 }
 0x606   :  { %1841 = vst [vmem:[#allocation8 + $0xa0] sm:$0xff] %v1763_v2 }
 0x60a   :  { %v2467_v44 = vpop.f32.mrb[86].mxu0 }
 0x60b   :  { %v1778_v53 = vadd.f32 %v2467_v44, %v3646_v49  ;;  %v1772_v57 = vpop.f32.mrb[87].mxu0 }
 0x60c   :  { %v1773_v30 = vadd.f32 %v3646_v49, %v1772_v57 }
 0x60d   :  { %1844 = vst [vmem:[#allocation8 + $0xb8] sm:$0xff] %v1778_v53 }
 0x60e   :  { %1843 = vst [vmem:[#allocation8 + $0xb0] sm:$0xff] %v1773_v30 }
 0x612   :  { %v2470_v22 = vpop.f32.mrb[88].mxu0 }
 0x613   :  { %v1788_v32 = vadd.f32 %v2470_v22, %v3646_v49  ;;  %v1782_v62 = vpop.f32.mrb[89].mxu0 }
 0x614   :  { %v1783_v42 = vadd.f32 %v3646_v49, %v1782_v62 }
 0x615   :  { %1846 = vst [vmem:[#allocation8 + $0xc8] sm:$0xff] %v1788_v32 }
 0x616   :  { %1845 = vst [vmem:[#allocation8 + $0xc0] sm:$0xff] %v1783_v42 }
 0x61a   :  { %v2473_v19 = vpop.f32.mrb[90].mxu0 }
 0x61b   :  { %v1798_v20 = vadd.f32 %v2473_v19, %v3646_v49  ;;  %v1792_v48 = vpop.f32.mrb[91].mxu0 }
 0x61c   :  { %v1793_v39 = vadd.f32 %v3646_v49, %v1792_v48 }
 0x61d   :  { %1848 = vst [vmem:[#allocation8 + $0xd8] sm:$0xff] %v1798_v20 }
 0x61e   :  { %1847 = vst [vmem:[#allocation8 + $0xd0] sm:$0xff] %v1793_v39 }
 0x622   :  { %v2476_v10 = vpop.f32.mrb[92].mxu0 }
 0x623   :  { %v1808_v34 = vadd.f32 %v2476_v10, %v3646_v49  ;;  %v1802_v25 = vpop.f32.mrb[93].mxu0 }
 0x624   :  { %v1803_v55 = vadd.f32 %v3646_v49, %v1802_v25 }
 0x625   :  { %1850 = vst [vmem:[#allocation8 + $0xe8] sm:$0xff] %v1808_v34 }
 0x626   :  { %1849 = vst [vmem:[#allocation8 + $0xe0] sm:$0xff] %v1803_v55 }
 0x62a   :  { %v2479_v4 = vpop.f32.mrb[94].mxu0 }
 0x62b   :  { %v1818_v51 = vadd.f32 %v2479_v4, %v3646_v49  ;;  %v1812_v60 = vpop.f32.mrb[95].mxu0 }
 0x62c   :  { %v1813_v1 = vadd.f32 %v3646_v49, %v1812_v60 }
 0x62d   :  { %1852 = vst [vmem:[#allocation8 + $0xf8] sm:$0xff] %v1818_v51 }
 0x62e   :  { %1851 = vst [vmem:[#allocation8 + $0xf0] sm:$0xff] %v1813_v1 }
 0x62f   :  { %2934 = shalt.err (!%p2931_p0)
}
 0x630   :  { %s2935_s12 = scalar_lea.hbm %s3700_s5, 4096 }
 0x631   :  { %p2936_p1 = scmp.ne.s32.totalorder %s3700_s5, %s2935_s12  ;;  %p2939_p2 = scmp.lt.u32.totalorder %s2935_s12, %s3700_s5 }
 0x633   :  { %p2941_p3 = pnand %p2939_p2, %p2936_p1 }
 0x635   :  { %2944 = shalt.err (!%p2941_p3)
}
 0x636   :  { %1864 = dma.vmem_to_hbm [thread:$0]  %s1859_s8, 4096, %s3700_s5, [#allocation4], %s2955_s1, %s2955_s1, %s2956_s17  }
 0x637   :  { %2949 = dma.done.wait [#allocation4], 4096  }
 0x638   :  { %2950 = vsyncadd [#allocation4], 4294963200 }
 0x639   :  { %1868 = vsyncpa [#allocation3], 1 }
 0x63a   :  { %1869 = vsyncpa [#allocation6], 1 }
 0x63b   :  { %1870 = vsyncpa [#allocation4], 1 }

</bundles_post_ra>
